<compile_context>
chip_gen: v5e
topology: v5e:2x2
jax: 0.10.0
libtpu: 0.0.40
codegen_flags: <defaults>
</compile_context>

<pallas_src>
import jax
import jax.numpy as jnp
from jax.experimental import pallas as pl
from jax.experimental.pallas import tpu as pltpu

# ----------------------------- static "schema" -------------------------------
ENTITIES = {0: 16, 1: 16}            # entity id -> number of instances
RELATIONS = {0: (0, 1), 1: (1, 0)}   # relation id -> (row entity, col entity)

INPUT_CHANNELS = 4
WIDTH = 32
EMBEDDING_DIM = 32
DEPTH = 2
OUTPUT_DIM = 4
BN_EPS = 1e-5

N0 = ENTITIES[0]
N1 = ENTITIES[1]
C2 = 2 * INPUT_CHANNELS     # lane width of the merged input data tensor
W2 = 2 * WIDTH              # lane width of the merged relation tensor
E2 = 2 * EMBEDDING_DIM      # lane width of the merged entity embeddings
LANES = 128                 # parameter slab is lane-dense


# --------------------------- parameter slab layout ----------------------------
def _align8(r):
    return (r + 7) & ~7


def _slab_layout():
    """Static (row, nrows, ncols) of every parameter block in the packed slab."""
    layout = {}
    row = 0

    def add(name, nrows, ncols):
        nonlocal row
        layout[name] = (row, nrows, ncols)
        row = _align8(row + nrows)

    for i in range(DEPTH):
        k = INPUT_CHANNELS if i == 0 else WIDTH
        add(f"wp{i}", 4 * k, E2)          # block-diag pooling weights  (2*2k, 2E)
        add(f"bp{i}", 1, E2)              # [b_e0 | b_e1]
    for i in range(DEPTH):
        add(f"wb{i}", E2, 2 * W2)         # block-diag broadcast weights (2E, 4W)
        add(f"bb{i}", 1, 2 * W2)          # [b_r0 | 0 | 0 | b_r1]
    add("wpf", W2, OUTPUT_DIM)            # final pooling weights for entity 0
    add("bpf", 1, OUTPUT_DIM)
    return layout, _align8(row)


SLAB_LAYOUT, SLAB_ROWS = _slab_layout()


# ------------------------------ fused Pallas kernel ---------------------------
def _fused_forward_kernel(data_ref, mask_ref, slab_ref, out_ref):
    """Entire AlternatingHGN forward in one kernel; intermediates never leave VMEM.

    data_ref : (N0, N1, 2C)  data_cat[i,j,:] = [data_r0[i,j,:] | data_r1[j,i,:]]
    mask_ref : (N0, N1, 2W)  mask_cat[i,j,:] = [m0[i,j]*1_W     | m1[j,i]*1_W    ]
    slab_ref : (SLAB_ROWS, 128) packed parameters, sliced at static offsets
    out_ref  : (N0, OUTPUT_DIM)
    """

    def slab(name):
        r, nr, nc = SLAB_LAYOUT[name]
        return slab_ref[r:r + nr, :nc]

    def dot(a, b):
        return jnp.dot(a, b, preferred_element_type=jnp.float32)

    def batchnorm(x):   # BatchNorm1d(affine=False, track_running_stats=False), batch stats
        mean = jnp.mean(x, axis=0, keepdims=True)
        var = jnp.mean(jnp.square(x - mean), axis=0, keepdims=True)   # biased variance
        return (x - mean) * jax.lax.rsqrt(var + BN_EPS)

    # reciprocal nonzero counts (pool_op='mean') in merged-lane layout, computed once
    mask = mask_ref[...]                                              # (N0, N1, 2W)
    rec_e0 = 1.0 / jnp.maximum(jnp.sum(mask, axis=1), 1.0)            # (N0, 2W) = [1/nnz_row m0 | 1/nnz_col m1]
    rec_e1 = 1.0 / jnp.maximum(jnp.sum(mask, axis=0), 1.0)            # (N1, 2W) = [1/nnz_col m0 | 1/nnz_row m1]
    # same per-instance counts, in the layer-0 (input-channel) lane layout
    C = INPUT_CHANNELS
    rec_e0_c = jnp.concatenate([rec_e0[:, :C], rec_e0[:, WIDTH:WIDTH + C]], axis=1)   # (N0, 2C)
    rec_e1_c = jnp.concatenate([rec_e1[:, :C], rec_e1[:, WIDTH:WIDTH + C]], axis=1)   # (N1, 2C)

    # pooled sums of the merged input tensor
    dcat = data_ref[...]                                              # (N0, N1, 2C)
    s_e0 = jnp.sum(dcat, axis=1)                                      # (N0, 2C) = [sr0 | sc1]
    s_e1 = jnp.sum(dcat, axis=0)                                      # (N1, 2C) = [sc0 | sr1]
    r_e0, r_e1 = rec_e0_c, rec_e1_c

    for i in range(DEPTH):
        # ---- Pool_i: mean over nonzeros -> one block-diagonal matmul for both entities ----
        p = jnp.concatenate([s_e0 * r_e0, s_e1 * r_e1], axis=1)       # (N, 4K) = [pr0|pc1|pc0|pr1]
        ecat = dot(p, slab(f"wp{i}")) + slab(f"bp{i}")                # (N, 2E) = [e0 | e1]
        # ---- ReLU + BatchNorm (per column; e0/e1 columns are disjoint, so identical to separate BN) ----
        ecat = batchnorm(jnp.maximum(ecat, 0.0))
        # ---- Bcast_i: one block-diagonal matmul -> lane-dense (N, 4W) = [row0|col1|col0|row1] ----
        pp = dot(ecat, slab(f"wb{i}")) + slab(f"bb{i}")               # biases only on the row halves
        a = pp[:, :W2]                                                # indexed by entity-0 instance i
        b = pp[:, W2:]                                                # indexed by entity-1 instance j
        # ---- merged relation tensor: y[i,j,:] = [x_r0[i,j,:] | x_r1[j,i,:]], ReLU + sparsity mask ----
        y = jnp.maximum(a[:, None, :] + b[None, :, :], 0.0) * mask_ref[...]
        # ---- pooled sums for the next pooling layer (relation tensors never leave VMEM/vregs) ----
        s_e0 = jnp.sum(y, axis=1)                                     # (N0, 2W) = [sr0 | sc1]
        s_e1 = jnp.sum(y, axis=0)                                     # (N1, 2W) = [sc0 | sr1]
        r_e0, r_e1 = rec_e0, rec_e1

    # ---- final pooling layer: only entity 0 is read out ([0].values, Identity activation) ----
    out_ref[...] = dot(s_e0 * r_e0, slab("wpf")) + slab("bpf")


# ------------------------------ kernel wrapper --------------------------------
@jax.jit
def alternating_hgn_forward(param_slab, data0, data1, mask0, mask1):
    # build the lane-concatenated ("merged relation") inputs once per call
    d0 = data0 * mask0[:, :, None]                       # make the masked-values contract explicit
    d1 = data1 * mask1[:, :, None]
    data_cat = jnp.concatenate([d0, jnp.transpose(d1, (1, 0, 2))], axis=-1)          # (N0,N1,2C)
    mask_cat = jnp.concatenate(
        [jnp.broadcast_to(mask0[:, :, None], (N0, N1, WIDTH)),
         jnp.broadcast_to(mask1.T[:, :, None], (N0, N1, WIDTH))], axis=-1)           # (N0,N1,2W)

    vmem = pl.BlockSpec(memory_space=pltpu.MemorySpace.VMEM)
    return pl.pallas_call(
        _fused_forward_kernel,
        out_shape=jax.ShapeDtypeStruct((N0, OUTPUT_DIM), jnp.float32),
        in_specs=[vmem, vmem, vmem],
        out_specs=vmem,
    )(data_cat, mask_cat, param_slab)


# ------------------------------ parameter handling -----------------------------
def init_params(key):
    params = {}

    def nxt():
        nonlocal key
        key, sub = jax.random.split(key)
        return sub

    for i in range(DEPTH + 1):
        in_dim = INPUT_CHANNELS if i == 0 else WIDTH
        out_dim = OUTPUT_DIM if i == DEPTH else EMBEDDING_DIM
        scale = 1.0 / jnp.sqrt(jnp.float32(in_dim))
        for r in RELATIONS:
            params[f"pool{i}_r{r}_row_w"] = scale * jax.random.normal(nxt(), (in_dim, out_dim), jnp.float32)
            params[f"pool{i}_r{r}_col_w"] = scale * jax.random.normal(nxt(), (in_dim, out_dim), jnp.float32)
        for e in ENTITIES:
            params[f"pool{i}_e{e}_b"] = 0.01 * jax.random.normal(nxt(), (1, out_dim), jnp.float32)

    for i in range(DEPTH):
        scale = 1.0 / jnp.sqrt(jnp.float32(EMBEDDING_DIM))
        for r in RELATIONS:
            params[f"bcast{i}_r{r}_row_w"] = scale * jax.random.normal(nxt(), (EMBEDDING_DIM, WIDTH), jnp.float32)
            params[f"bcast{i}_r{r}_col_w"] = scale * jax.random.normal(nxt(), (EMBEDDING_DIM, WIDTH), jnp.float32)
            params[f"bcast{i}_r{r}_b"] = 0.01 * jax.random.normal(nxt(), (1, WIDTH), jnp.float32)
    return params


def pack_params(params):
    """Host-side (one-time) packing of all weights into a single lane-dense f32 slab."""
    slab = jnp.zeros((SLAB_ROWS, LANES), jnp.float32)

    def put(name, block):
        nonlocal slab
        r, nr, nc = SLAB_LAYOUT[name]
        assert block.shape == (nr, nc), (name, block.shape, (nr, nc))
        slab = slab.at[r:r + nr, :nc].set(block.astype(jnp.float32))

    for i in range(DEPTH):
        k = INPUT_CHANNELS if i == 0 else WIDTH
        z = jnp.zeros((k, EMBEDDING_DIM), jnp.float32)
        # block-diagonal pooling weight; K-blocks ordered as [pr0 | pc1 | pc0 | pr1]
        wp = jnp.block([
            [params[f"pool{i}_r0_row_w"], z],
            [params[f"pool{i}_r1_col_w"], z],
            [z, params[f"pool{i}_r0_col_w"]],
            [z, params[f"pool{i}_r1_row_w"]],
        ])                                                                      # (4k, 2E)
        put(f"wp{i}", wp)
        put(f"bp{i}", jnp.concatenate([params[f"pool{i}_e0_b"],
                                       params[f"pool{i}_e1_b"]], axis=1))        # (1, 2E)
        ze = jnp.zeros((EMBEDDING_DIM, W2), jnp.float32)
        wb = jnp.block([
            [jnp.concatenate([params[f"bcast{i}_r0_row_w"],
                              params[f"bcast{i}_r1_col_w"]], axis=1), ze],
            [ze, jnp.concatenate([params[f"bcast{i}_r0_col_w"],
                                  params[f"bcast{i}_r1_row_w"]], axis=1)],
        ])                                                                      # (2E, 4W)
        put(f"wb{i}", wb)
        zw = jnp.zeros((1, WIDTH), jnp.float32)
        put(f"bb{i}", jnp.concatenate([params[f"bcast{i}_r0_b"], zw, zw,
                                       params[f"bcast{i}_r1_b"]], axis=1))       # (1, 4W)

    put("wpf", jnp.concatenate([params[f"pool{DEPTH}_r0_row_w"],
                                params[f"pool{DEPTH}_r1_col_w"]], axis=0))       # (2W, OUT)
    put("bpf", params[f"pool{DEPTH}_e0_b"])                                      # (1, OUT)
    return slab


# ------------------------------ pure-JAX reference ------------------------------
def reference_forward(params, data, masks):
    hi = jax.lax.Precision.HIGHEST

    def pool(i, data):
        emb = {e: None for e in ENTITIES}
        for r, (es, ed) in RELATIONS.items():
            v, m = data[r], masks[r]
            pr = jnp.sum(v, axis=1) / jnp.maximum(jnp.sum(m, axis=1, keepdims=True), 1.0)
            pc = jnp.sum(v, axis=0) / jnp.maximum(jnp.sum(m, axis=0)[:, None], 1.0)
            cr = jnp.dot(pr, params[f"pool{i}_r{r}_row_w"], precision=hi)
            cc = jnp.dot(pc, params[f"pool{i}_r{r}_col_w"], precision=hi)
            emb[es] = cr if emb[es] is None else emb[es] + cr
            emb[ed] = cc if emb[ed] is None else emb[ed] + cc
        return {e: emb[e] + params[f"pool{i}_e{e}_b"] for e in ENTITIES}

    def bn(x):
        mean = jnp.mean(x, axis=0, keepdims=True)
        var = jnp.mean(jnp.square(x - mean), axis=0, keepdims=True)
        return (x - mean) * jax.lax.rsqrt(var + BN_EPS)

    for i in range(DEPTH):
        emb = {e: bn(jnp.maximum(v, 0.0)) for e, v in pool(i, data).items()}
        new_data = {}
        for r, (es, ed) in RELATIONS.items():
            row = jnp.dot(emb[es], params[f"bcast{i}_r{r}_row_w"], precision=hi) + params[f"bcast{i}_r{r}_b"]
            col = jnp.dot(emb[ed], params[f"bcast{i}_r{r}_col_w"], precision=hi)
            x = jnp.maximum(row[:, None, :] + col[None, :, :], 0.0)
            new_data[r] = x * masks[r][:, :, None]
        data = new_data
    return pool(DEPTH, data)[0]


# ----------------------------------- main --------------------------------------
if __name__ == "__main__":
    key = jax.random.PRNGKey(0)
    key, kp = jax.random.split(key)
    params = init_params(kp)
    param_slab = pack_params(params)

    data, masks = {}, {}
    for r, (es, ed) in RELATIONS.items():
        ns, nd = ENTITIES[es], ENTITIES[ed]
        key, km, kv = jax.random.split(key, 3)
        mask = (jax.random.uniform(km, (ns, nd)) < 0.35).astype(jnp.float32)
        vals = jax.random.normal(kv, (ns, nd, INPUT_CHANNELS), jnp.float32)
        masks[r] = mask
        data[r] = vals * mask[:, :, None]        # values only exist on the sparsity pattern

    out = alternating_hgn_forward(param_slab, data[0], data[1], masks[0], masks[1])
    out = jax.block_until_ready(out)

    assert out.shape == (ENTITIES[0], OUTPUT_DIM), out.shape
    assert bool(jnp.all(jnp.isfinite(out)))

    ref = reference_forward(params, data, masks)
    assert bool(jnp.allclose(out, ref, rtol=2e-2, atol=2e-2)), float(jnp.max(jnp.abs(out - ref)))

    print("KERNEL_OK")
</pallas_src>

<mosaic_0001>
module attributes {stable_mosaic.version = 11 : i64} {
  func.func @_fused_forward_kernel(%arg0: memref<16x16x8xf32, #tpu.memory_space<vmem>>, %arg1: memref<16x16x64xf32, #tpu.memory_space<vmem>>, %arg2: memref<376x128xf32, #tpu.memory_space<vmem>>, %arg3: memref<16x4xf32, #tpu.memory_space<vmem>>) attributes {dimension_semantics = [], scalar_prefetch = 0 : i64, scratch_operands = 0 : i64, tpu.core_type = #tpu.core_type<tc>} {
    %c0 = arith.constant 0 : index
    %c0_0 = arith.constant 0 : index
    %c0_1 = arith.constant 0 : index
    %0 = vector.load %arg1[%c0, %c0_0, %c0_1] : memref<16x16x64xf32, #tpu.memory_space<vmem>>, vector<16x16x64xf32>
    %cst = arith.constant dense<0.000000e+00> : vector<16x64xf32>
    %1 = vector.multi_reduction <add>, %0, %cst [1] : vector<16x16x64xf32> to vector<16x64xf32>
    %cst_2 = arith.constant 1.000000e+00 : f32
    %2 = vector.broadcast %cst_2 : f32 to vector<16x64xf32>
    %3 = arith.maximumf %1, %2 : vector<16x64xf32>
    %cst_3 = arith.constant 1.000000e+00 : f32
    %4 = vector.broadcast %cst_3 : f32 to vector<16x64xf32>
    %5 = arith.divf %4, %3 : vector<16x64xf32>
    %cst_4 = arith.constant dense<0.000000e+00> : vector<16x64xf32>
    %6 = vector.multi_reduction <add>, %0, %cst_4 [0] : vector<16x16x64xf32> to vector<16x64xf32>
    %cst_5 = arith.constant 1.000000e+00 : f32
    %7 = vector.broadcast %cst_5 : f32 to vector<16x64xf32>
    %8 = arith.maximumf %6, %7 : vector<16x64xf32>
    %cst_6 = arith.constant 1.000000e+00 : f32
    %9 = vector.broadcast %cst_6 : f32 to vector<16x64xf32>
    %10 = arith.divf %9, %8 : vector<16x64xf32>
    %11 = vector.extract_strided_slice %5 {offsets = [0, 0], sizes = [16, 4], strides = [1, 1]} : vector<16x64xf32> to vector<16x4xf32>
    %12 = vector.extract_strided_slice %5 {offsets = [0, 32], sizes = [16, 4], strides = [1, 1]} : vector<16x64xf32> to vector<16x4xf32>
    %13 = tpu.concatenate %11, %12 in 1 : vector<16x4xf32>, vector<16x4xf32> -> vector<16x8xf32>
    %14 = vector.extract_strided_slice %10 {offsets = [0, 0], sizes = [16, 4], strides = [1, 1]} : vector<16x64xf32> to vector<16x4xf32>
    %15 = vector.extract_strided_slice %10 {offsets = [0, 32], sizes = [16, 4], strides = [1, 1]} : vector<16x64xf32> to vector<16x4xf32>
    %16 = tpu.concatenate %14, %15 in 1 : vector<16x4xf32>, vector<16x4xf32> -> vector<16x8xf32>
    %c0_7 = arith.constant 0 : index
    %c0_8 = arith.constant 0 : index
    %c0_9 = arith.constant 0 : index
    %17 = vector.load %arg0[%c0_7, %c0_8, %c0_9] : memref<16x16x8xf32, #tpu.memory_space<vmem>>, vector<16x16x8xf32>
    %cst_10 = arith.constant dense<0.000000e+00> : vector<16x8xf32>
    %18 = vector.multi_reduction <add>, %17, %cst_10 [1] : vector<16x16x8xf32> to vector<16x8xf32>
    %cst_11 = arith.constant dense<0.000000e+00> : vector<16x8xf32>
    %19 = vector.multi_reduction <add>, %17, %cst_11 [0] : vector<16x16x8xf32> to vector<16x8xf32>
    %20 = arith.mulf %18, %13 : vector<16x8xf32>
    %21 = arith.mulf %19, %16 : vector<16x8xf32>
    %22 = tpu.concatenate %20, %21 in 1 : vector<16x8xf32>, vector<16x8xf32> -> vector<16x16xf32>
    %c0_12 = arith.constant 0 : index
    %c0_13 = arith.constant 0 : index
    %23 = vector.load %arg2[%c0_12, %c0_13] : memref<376x128xf32, #tpu.memory_space<vmem>>, vector<16x64xf32>
    %cst_14 = arith.constant dense<0.000000e+00> : vector<16x64xf32>
    %24 = tpu.matmul %22, %23, %cst_14 {dimension_numbers = #tpu.dot_dimension_numbers<[1], [0], [0], [1], [0, 0, 1, 1], [], []>} : vector<16x16xf32>, vector<16x64xf32>, vector<16x64xf32> -> vector<16x64xf32>
    %c16 = arith.constant 16 : index
    %c0_15 = arith.constant 0 : index
    %25 = vector.load %arg2[%c16, %c0_15] : memref<376x128xf32, #tpu.memory_space<vmem>>, vector<1x64xf32>
    %26 = vector.broadcast %25 : vector<1x64xf32> to vector<16x64xf32>
    %27 = arith.addf %24, %26 : vector<16x64xf32>
    %cst_16 = arith.constant 0.000000e+00 : f32
    %28 = vector.broadcast %cst_16 : f32 to vector<16x64xf32>
    %29 = arith.maximumf %27, %28 : vector<16x64xf32>
    %cst_17 = arith.constant dense<0.000000e+00> : vector<64xf32>
    %30 = vector.multi_reduction <add>, %29, %cst_17 [0] : vector<16x64xf32> to vector<64xf32>
    %31 = vector.shape_cast %30 : vector<64xf32> to vector<1x64xf32>
    %cst_18 = arith.constant 1.600000e+01 : f32
    %32 = vector.broadcast %cst_18 : f32 to vector<1x64xf32>
    %33 = arith.divf %31, %32 : vector<1x64xf32>
    %34 = vector.broadcast %33 : vector<1x64xf32> to vector<16x64xf32>
    %35 = arith.subf %29, %34 : vector<16x64xf32>
    %36 = arith.mulf %35, %35 : vector<16x64xf32>
    %cst_19 = arith.constant dense<0.000000e+00> : vector<64xf32>
    %37 = vector.multi_reduction <add>, %36, %cst_19 [0] : vector<16x64xf32> to vector<64xf32>
    %38 = vector.shape_cast %37 : vector<64xf32> to vector<1x64xf32>
    %cst_20 = arith.constant 1.600000e+01 : f32
    %39 = vector.broadcast %cst_20 : f32 to vector<1x64xf32>
    %40 = arith.divf %38, %39 : vector<1x64xf32>
    %41 = vector.broadcast %33 : vector<1x64xf32> to vector<16x64xf32>
    %42 = arith.subf %29, %41 : vector<16x64xf32>
    %cst_21 = arith.constant 9.99999974E-6 : f32
    %43 = vector.broadcast %cst_21 : f32 to vector<1x64xf32>
    %44 = arith.addf %40, %43 : vector<1x64xf32>
    %45 = math.rsqrt %44 : vector<1x64xf32>
    %46 = vector.broadcast %45 : vector<1x64xf32> to vector<16x64xf32>
    %47 = arith.mulf %42, %46 : vector<16x64xf32>
    %c160 = arith.constant 160 : index
    %c0_22 = arith.constant 0 : index
    %48 = vector.load %arg2[%c160, %c0_22] : memref<376x128xf32, #tpu.memory_space<vmem>>, vector<64x128xf32>
    %cst_23 = arith.constant dense<0.000000e+00> : vector<16x128xf32>
    %49 = tpu.matmul %47, %48, %cst_23 {dimension_numbers = #tpu.dot_dimension_numbers<[1], [0], [0], [1], [0, 0, 1, 1], [], []>} : vector<16x64xf32>, vector<64x128xf32>, vector<16x128xf32> -> vector<16x128xf32>
    %c224 = arith.constant 224 : index
    %c0_24 = arith.constant 0 : index
    %50 = vector.load %arg2[%c224, %c0_24] : memref<376x128xf32, #tpu.memory_space<vmem>>, vector<1x128xf32>
    %51 = vector.broadcast %50 : vector<1x128xf32> to vector<16x128xf32>
    %52 = arith.addf %49, %51 : vector<16x128xf32>
    %53 = vector.extract_strided_slice %52 {offsets = [0, 0], sizes = [16, 64], strides = [1, 1]} : vector<16x128xf32> to vector<16x64xf32>
    %54 = vector.extract_strided_slice %52 {offsets = [0, 64], sizes = [16, 64], strides = [1, 1]} : vector<16x128xf32> to vector<16x64xf32>
    %55 = vector.shape_cast %53 : vector<16x64xf32> to vector<16x1x64xf32>
    %56 = vector.shape_cast %54 : vector<16x64xf32> to vector<1x16x64xf32>
    %57 = vector.broadcast %55 : vector<16x1x64xf32> to vector<16x16x64xf32>
    %58 = vector.broadcast %56 : vector<1x16x64xf32> to vector<16x16x64xf32>
    %59 = arith.addf %57, %58 : vector<16x16x64xf32>
    %cst_25 = arith.constant 0.000000e+00 : f32
    %60 = vector.broadcast %cst_25 : f32 to vector<16x16x64xf32>
    %61 = arith.maximumf %59, %60 : vector<16x16x64xf32>
    %c0_26 = arith.constant 0 : index
    %c0_27 = arith.constant 0 : index
    %c0_28 = arith.constant 0 : index
    %62 = vector.load %arg1[%c0_26, %c0_27, %c0_28] : memref<16x16x64xf32, #tpu.memory_space<vmem>>, vector<16x16x64xf32>
    %63 = arith.mulf %61, %62 : vector<16x16x64xf32>
    %cst_29 = arith.constant dense<0.000000e+00> : vector<16x64xf32>
    %64 = vector.multi_reduction <add>, %63, %cst_29 [1] : vector<16x16x64xf32> to vector<16x64xf32>
    %cst_30 = arith.constant dense<0.000000e+00> : vector<16x64xf32>
    %65 = vector.multi_reduction <add>, %63, %cst_30 [0] : vector<16x16x64xf32> to vector<16x64xf32>
    %66 = arith.mulf %64, %5 : vector<16x64xf32>
    %67 = arith.mulf %65, %10 : vector<16x64xf32>
    %68 = tpu.concatenate %66, %67 in 1 : vector<16x64xf32>, vector<16x64xf32> -> vector<16x128xf32>
    %c24 = arith.constant 24 : index
    %c0_31 = arith.constant 0 : index
    %69 = vector.load %arg2[%c24, %c0_31] : memref<376x128xf32, #tpu.memory_space<vmem>>, vector<128x64xf32>
    %cst_32 = arith.constant dense<0.000000e+00> : vector<16x64xf32>
    %70 = tpu.matmul %68, %69, %cst_32 {dimension_numbers = #tpu.dot_dimension_numbers<[1], [0], [0], [1], [0, 0, 1, 1], [], []>} : vector<16x128xf32>, vector<128x64xf32>, vector<16x64xf32> -> vector<16x64xf32>
    %c152 = arith.constant 152 : index
    %c0_33 = arith.constant 0 : index
    %71 = vector.load %arg2[%c152, %c0_33] : memref<376x128xf32, #tpu.memory_space<vmem>>, vector<1x64xf32>
    %72 = vector.broadcast %71 : vector<1x64xf32> to vector<16x64xf32>
    %73 = arith.addf %70, %72 : vector<16x64xf32>
    %cst_34 = arith.constant 0.000000e+00 : f32
    %74 = vector.broadcast %cst_34 : f32 to vector<16x64xf32>
    %75 = arith.maximumf %73, %74 : vector<16x64xf32>
    %cst_35 = arith.constant dense<0.000000e+00> : vector<64xf32>
    %76 = vector.multi_reduction <add>, %75, %cst_35 [0] : vector<16x64xf32> to vector<64xf32>
    %77 = vector.shape_cast %76 : vector<64xf32> to vector<1x64xf32>
    %cst_36 = arith.constant 1.600000e+01 : f32
    %78 = vector.broadcast %cst_36 : f32 to vector<1x64xf32>
    %79 = arith.divf %77, %78 : vector<1x64xf32>
    %80 = vector.broadcast %79 : vector<1x64xf32> to vector<16x64xf32>
    %81 = arith.subf %75, %80 : vector<16x64xf32>
    %82 = arith.mulf %81, %81 : vector<16x64xf32>
    %cst_37 = arith.constant dense<0.000000e+00> : vector<64xf32>
    %83 = vector.multi_reduction <add>, %82, %cst_37 [0] : vector<16x64xf32> to vector<64xf32>
    %84 = vector.shape_cast %83 : vector<64xf32> to vector<1x64xf32>
    %cst_38 = arith.constant 1.600000e+01 : f32
    %85 = vector.broadcast %cst_38 : f32 to vector<1x64xf32>
    %86 = arith.divf %84, %85 : vector<1x64xf32>
    %87 = vector.broadcast %79 : vector<1x64xf32> to vector<16x64xf32>
    %88 = arith.subf %75, %87 : vector<16x64xf32>
    %cst_39 = arith.constant 9.99999974E-6 : f32
    %89 = vector.broadcast %cst_39 : f32 to vector<1x64xf32>
    %90 = arith.addf %86, %89 : vector<1x64xf32>
    %91 = math.rsqrt %90 : vector<1x64xf32>
    %92 = vector.broadcast %91 : vector<1x64xf32> to vector<16x64xf32>
    %93 = arith.mulf %88, %92 : vector<16x64xf32>
    %c232 = arith.constant 232 : index
    %c0_40 = arith.constant 0 : index
    %94 = vector.load %arg2[%c232, %c0_40] : memref<376x128xf32, #tpu.memory_space<vmem>>, vector<64x128xf32>
    %cst_41 = arith.constant dense<0.000000e+00> : vector<16x128xf32>
    %95 = tpu.matmul %93, %94, %cst_41 {dimension_numbers = #tpu.dot_dimension_numbers<[1], [0], [0], [1], [0, 0, 1, 1], [], []>} : vector<16x64xf32>, vector<64x128xf32>, vector<16x128xf32> -> vector<16x128xf32>
    %c296 = arith.constant 296 : index
    %c0_42 = arith.constant 0 : index
    %96 = vector.load %arg2[%c296, %c0_42] : memref<376x128xf32, #tpu.memory_space<vmem>>, vector<1x128xf32>
    %97 = vector.broadcast %96 : vector<1x128xf32> to vector<16x128xf32>
    %98 = arith.addf %95, %97 : vector<16x128xf32>
    %99 = vector.extract_strided_slice %98 {offsets = [0, 0], sizes = [16, 64], strides = [1, 1]} : vector<16x128xf32> to vector<16x64xf32>
    %100 = vector.extract_strided_slice %98 {offsets = [0, 64], sizes = [16, 64], strides = [1, 1]} : vector<16x128xf32> to vector<16x64xf32>
    %101 = vector.shape_cast %99 : vector<16x64xf32> to vector<16x1x64xf32>
    %102 = vector.shape_cast %100 : vector<16x64xf32> to vector<1x16x64xf32>
    %103 = vector.broadcast %101 : vector<16x1x64xf32> to vector<16x16x64xf32>
    %104 = vector.broadcast %102 : vector<1x16x64xf32> to vector<16x16x64xf32>
    %105 = arith.addf %103, %104 : vector<16x16x64xf32>
    %cst_43 = arith.constant 0.000000e+00 : f32
    %106 = vector.broadcast %cst_43 : f32 to vector<16x16x64xf32>
    %107 = arith.maximumf %105, %106 : vector<16x16x64xf32>
    %c0_44 = arith.constant 0 : index
    %c0_45 = arith.constant 0 : index
    %c0_46 = arith.constant 0 : index
    %108 = vector.load %arg1[%c0_44, %c0_45, %c0_46] : memref<16x16x64xf32, #tpu.memory_space<vmem>>, vector<16x16x64xf32>
    %109 = arith.mulf %107, %108 : vector<16x16x64xf32>
    %cst_47 = arith.constant dense<0.000000e+00> : vector<16x64xf32>
    %110 = vector.multi_reduction <add>, %109, %cst_47 [1] : vector<16x16x64xf32> to vector<16x64xf32>
    %111 = arith.mulf %110, %5 : vector<16x64xf32>
    %c304 = arith.constant 304 : index
    %c0_48 = arith.constant 0 : index
    %112 = vector.load %arg2[%c304, %c0_48] : memref<376x128xf32, #tpu.memory_space<vmem>>, vector<64x4xf32>
    %cst_49 = arith.constant dense<0.000000e+00> : vector<16x4xf32>
    %113 = tpu.matmul %111, %112, %cst_49 {dimension_numbers = #tpu.dot_dimension_numbers<[1], [0], [0], [1], [0, 0, 1, 1], [], []>} : vector<16x64xf32>, vector<64x4xf32>, vector<16x4xf32> -> vector<16x4xf32>
    %c368 = arith.constant 368 : index
    %c0_50 = arith.constant 0 : index
    %114 = vector.load %arg2[%c368, %c0_50] : memref<376x128xf32, #tpu.memory_space<vmem>>, vector<1x4xf32>
    %115 = vector.broadcast %114 : vector<1x4xf32> to vector<16x4xf32>
    %116 = arith.addf %113, %115 : vector<16x4xf32>
    %c0_51 = arith.constant 0 : index
    %c0_52 = arith.constant 0 : index
    %117 = vector.load %arg3[%c0_51, %c0_52] : memref<16x4xf32, #tpu.memory_space<vmem>>, vector<16x4xf32>
    tpu.vector_store %arg3[%c0_51, %c0_52], %116 {strides = array<i32>} : memref<16x4xf32, #tpu.memory_space<vmem>>, vector<16x4xf32>,
    return
  }
}

</mosaic_0001>

<bundles_post_ra>
// kernel: alternating_hgn_forward.1
= control target key start
LH: loop header
LB: loop body
LE: loop exit
PB: predicated region body
PF: predicated region fallthrough
CT: control target
= control target key end

     0   :  { %vm3881_vm0 = vcmask 523264   ;;  %s1984_s22 = smov 100   ;;  %s3877_s1 = inlined_call_operand.vmem [shape: f32[16,16,64], index: 1, kind: input, shape index: {}]   ;;  %s3878_s0 = inlined_call_operand.vmem [shape: f32[16,16,8], index: 0, kind: input, shape index: {}]   ;;  %s3879_s2 = inlined_call_operand.vmem [shape: f32[376,128], index: 2, kind: input, shape index: {}]   ;;  %s3880_s3 = inlined_call_operand.vmem [shape: f32[16,4], index: 3, kind: output, shape index: {}]  }
   0x1   :  { %v14_v0 = vld [vmem:[%s3877_s1] sm:$0xff]  ;;  %v16_v1 = vld [vmem:[%s3877_s1 + $0x10] sm:$0xff]  ;;  %v15_v13 = vld [vmem:[%s3877_s1 + $0x8] sm:$0xff] }
   0x2   :  { %v18_v2 = vld [vmem:[%s3877_s1 + $0x20] sm:$0xff]  ;;  %v20_v3 = vld [vmem:[%s3877_s1 + $0x30] sm:$0xff]  ;;  %v2021_v4 = vsel %vm3881_vm0, %v14_v0, 0.0  ;;  %v2024_v5 = vsel %vm3881_vm0, %v16_v1, 0.0  ;;  %v17_v14 = vld [vmem:[%s3877_s1 + $0x18] sm:$0xff]  ;;  %v2061_v19 = vsel %vm3881_vm0, %v15_v13, 0.0 }
   0x3   :  { %v2027_v6 = vsel %vm3881_vm0, %v18_v2, 0.0  ;;  %v22_v7 = vld [vmem:[%s3877_s1 + $0x40] sm:$0xff]  ;;  %v447_v8 = vadd.f32 %v2024_v5, %v2021_v4  ;;  %v2035_v9 = vsel %vm3881_vm0, %v20_v3, 0.0  ;;  %v24_v10 = vld [vmem:[%s3877_s1 + $0x50] sm:$0xff]  ;;  %v19_v17 = vld [vmem:[%s3877_s1 + $0x28] sm:$0xff]  ;;  %v2064_v20 = vsel %vm3881_vm0, %v17_v14, 0.0 }
   0x4   :  { %v2042_v12 = vsel %vm3881_vm0, %v22_v7, 0.0  ;;  %v26_v15 = vld [vmem:[%s3877_s1 + $0x60] sm:$0xff]  ;;  %v21_v18 = vld [vmem:[%s3877_s1 + $0x38] sm:$0xff]  ;;  %v2067_v21 = vsel %vm3881_vm0, %v24_v10, 0.0  ;;  %v2070_v22 = vsel %vm3881_vm0, %v19_v17, 0.0  ;;  %v462_v23 = vadd.f32 %v2064_v20, %v2061_v19  ;;  %v28_v24 = vld [vmem:[%s3877_s1 + $0x70] sm:$0xff] }
   0x5   :  { %v448_v11 = vadd.f32 %v447_v8, %v2027_v6  ;;  %v2079_v26 = vsel %vm3881_vm0, %v21_v18, 0.0  ;;  %v2082_v27 = vsel %vm3881_vm0, %v26_v15, 0.0  ;;  %v23_v28 = vld [vmem:[%s3877_s1 + $0x48] sm:$0xff]  ;;  %v30_v30 = vld [vmem:[%s3877_s1 + $0x80] sm:$0xff]  ;;  %v2093_v32 = vsel %vm3881_vm0, %v28_v24, 0.0  ;;  %v32_v34 = vld [vmem:[%s3877_s1 + $0x90] sm:$0xff] }
   0x6   :  { %v463_v29 = vadd.f32 %v462_v23, %v2070_v22  ;;  %v2101_v36 = vsel %vm3881_vm0, %v23_v28, 0.0  ;;  %v34_v37 = vld [vmem:[%s3877_s1 + $0xa0] sm:$0xff]  ;;  %v36_v38 = vld [vmem:[%s3877_s1 + $0xb0] sm:$0xff]  ;;  %v119_v39 = vsel %vm3881_vm0, %v30_v30, 0.0  ;;  %v25_v40 = vld [vmem:[%s3877_s1 + $0x58] sm:$0xff]  ;;  %v128_v45 = vsel %vm3881_vm0, %v32_v34, 0.0 }
   0x7   :  { %v449_v16 = vadd.f32 %v448_v11, %v2035_v9  ;;  %v38_v41 = vld [vmem:[%s3877_s1 + $0xc0] sm:$0xff]  ;;  %v40_v42 = vld [vmem:[%s3877_s1 + $0xd0] sm:$0xff]  ;;  %v33_v46 = vld [vmem:[%s3877_s1 + $0x98] sm:$0xff]  ;;  %v137_v50 = vsel %vm3881_vm0, %v34_v37, 0.0  ;;  %v146_v51 = vsel %vm3881_vm0, %v36_v38, 0.0  ;;  %v2137_v53 = vsel %vm3881_vm0, %v25_v40, 0.0 }
   0x8   :  { %v464_v33 = vadd.f32 %v463_v29, %v2079_v26  ;;  %v42_v43 = vld [vmem:[%s3877_s1 + $0xe0] sm:$0xff]  ;;  %v35_v47 = vld [vmem:[%s3877_s1 + $0xa8] sm:$0xff]  ;;  %v37_v48 = vld [vmem:[%s3877_s1 + $0xb8] sm:$0xff]  ;;  %v155_v54 = vsel %vm3881_vm0, %v38_v41, 0.0  ;;  %v164_v55 = vsel %vm3881_vm0, %v40_v42, 0.0  ;;  %v129_v63 = vsel %vm3881_vm0, %v33_v46, 0.0 }
   0x9   :  { %v450_v25 = vadd.f32 %v449_v16, %v2042_v12  ;;  %v173_v56 = vsel %vm3881_vm0, %v42_v43, 0.0  ;;  %v27_v57 = vld [vmem:[%s3877_s1 + $0x68] sm:$0xff]  ;;  %v41_v61 = vld [vmem:[%s3877_s1 + $0xd8] sm:$0xff]  ;;  %v138_v0 = vsel %vm3881_vm0, %v35_v47, 0.0  ;;  %v147_v1 = vsel %vm3881_vm0, %v37_v48, 0.0  ;;  %v44_v24 = vld [vmem:[%s3877_s1 + $0xf0] sm:$0xff] }
   0xa   :  { %v465_v49 = vadd.f32 %v464_v33, %v2101_v36  ;;  %v31_v58 = vld [vmem:[%s3877_s1 + $0x88] sm:$0xff]  ;;  %v130_v2 = vadd.f32 %v129_v63, %v128_v45  ;;  %v139_v3 = vadd.f32 %v138_v0, %v137_v50  ;;  %v148_v7 = vadd.f32 %v147_v1, %v146_v51  ;;  %v29_v15 = vld [vmem:[%s3877_s1 + $0x78] sm:$0xff] }
   0xb   :  { %v451_v31 = vadd.f32 %v450_v25, %v2067_v21  ;;  %v39_v59 = vld [vmem:[%s3877_s1 + $0xc8] sm:$0xff]  ;;  %v2162_v11 = vsel %vm3881_vm0, %v27_v57, 0.0  ;;  %v120_v13 = vsel %vm3881_vm0, %v31_v58, 0.0  ;;  %v2170_v18 = vsel %vm3881_vm0, %v41_v61, 0.0  ;;  %v45_v28 = vld [vmem:[%s3877_s1 + $0xf8] sm:$0xff] }
   0xc   :  { %v43_v62 = vld [vmem:[%s3877_s1 + $0xe8] sm:$0xff]  ;;  %v466_v8 = vadd.f32 %v465_v49, %v2137_v53  ;;  %v156_v14 = vsel %vm3881_vm0, %v39_v59, 0.0  ;;  %v121_v16 = vadd.f32 %v120_v13, %v119_v39  ;;  %v166_v29 = vadd.f32 %v2170_v18, %v164_v55 }
   0xd   :  { %v452_v35 = vadd.f32 %v451_v31, %v2082_v27  ;;  %v157_v17 = vadd.f32 %v156_v14, %v155_v54  ;;  %v2173_v23 = vsel %vm3881_vm0, %v43_v62, 0.0  ;;  %v131_v31 = vrot.slane %v130_v2, 4 }
   0xe   :  { %v175_v30 = vadd.f32 %v2173_v23, %v173_v56  ;;  %v140_v33 = vrot.slane %v139_v3, 4  ;;  %v149_v34 = vrot.slane %v148_v7, 4  ;;  %v2185_v38 = vsel %vm3881_vm0, %v29_v15, 0.0 }
   0xf   :  { %v453_v44 = vadd.f32 %v452_v35, %v2093_v32  ;;  %v467_v35 = vadd.f32 %v466_v8, %v2162_v11  ;;  %v122_v40 = vrot.slane %v121_v16, 4  ;;  %v158_v41 = vrot.slane %v157_v17, 4 }
  0x10   :  { %v2189_v42 = vsel %vm3881_vm0, %v45_v28, 0.0  ;;  %v2192_v47 = vadd.f32 %v131_v31, %v130_v2  ;;  %v2194_v48 = vadd.f32 %v140_v33, %v139_v3  ;;  %v2196_v49 = vadd.f32 %v149_v34, %v148_v7 }
  0x11   :  { %v454_v52 = vadd.f32 %v453_v44, %v119_v39  ;;  %v182_v39 = vsel %vm3881_vm0, %v44_v24, 0.0  ;;  %v167_v44 = vrot.slane %v166_v29, 4  ;;  %v58_v8 = vadd.f32 %v2064_v20, %v2024_v5 }
  0x12   :  { %v184_v46 = vadd.f32 %v2189_v42, %v182_v39  ;;  %v133_v61 = vrot.slane %v2192_v47, 2  ;;  %v142_v62 = vrot.slane %v2194_v48, 2  ;;  %v151_v2 = vrot.slane %v2196_v49, 2 }
  0x13   :  { %v455_v60 = vadd.f32 %v454_v52, %v128_v45  ;;  %v176_v45 = vrot.slane %v175_v30, 4  ;;  %v2199_v52 = vadd.f32 %v122_v40, %v121_v16  ;;  %v76_v16 = vadd.f32 %v2079_v26, %v2035_v9 }
  0x14   :  { %v103_v40 = vadd.f32 %v2162_v11, %v2082_v27 }
  0x15   :  { %v456_v10 = vadd.f32 %v455_v60, %v137_v50  ;;  %v468_v50 = vadd.f32 %v467_v35, %v2185_v38  ;;  %v2205_v59 = vadd.f32 %v176_v45, %v175_v30  ;;  %v185_v60 = vrot.slane %v184_v46, 4 }
  0x17   :  { %v457_v25 = vadd.f32 %v456_v10, %v146_v51  ;;  %v469_v57 = vadd.f32 %v468_v50, %v120_v13  ;;  %v67_v10 = vadd.f32 %v2070_v22, %v2027_v6  ;;  %v2222_v24 = vadd.f32 %v185_v60, %v184_v46 }
  0x18   :  { %v59_v6 = vrot.slane %v58_v8, 4 }
  0x19   :  { %v458_v37 = vadd.f32 %v457_v25, %v155_v54  ;;  %v2201_v54 = vadd.f32 %v158_v41, %v157_v17  ;;  %v470_v3 = vadd.f32 %v469_v57, %v129_v63  ;;  %v85_v17 = vadd.f32 %v2101_v36, %v2042_v12 }
  0x1a   :  { %v68_v20 = vrot.slane %v67_v10, 4  ;;  %v60_v28 = vadd.f32 %v59_v6, %v58_v8  ;;  %v104_v8 = vrot.slane %v103_v40, 4 }
  0x1b   :  { %v459_v43 = vadd.f32 %v458_v37, %v164_v55  ;;  %v2203_v55 = vadd.f32 %v167_v44, %v166_v29  ;;  %v160_v13 = vrot.slane %v2201_v54, 2  ;;  %v471_v15 = vadd.f32 %v470_v3, %v138_v0 }
  0x1c   :  { %v77_v0 = vrot.slane %v76_v16, 4  ;;  %v86_v25 = vrot.slane %v85_v17, 4  ;;  %v69_v12 = vadd.f32 %v68_v20, %v67_v10 }
  0x1d   :  { %v460_v51 = vadd.f32 %v459_v43, %v173_v56  ;;  %v49_v56 = vadd.f32 %v2061_v19, %v2021_v4  ;;  %v169_v63 = vrot.slane %v2203_v55, 2  ;;  %v94_v4 = vadd.f32 %v2137_v53, %v2067_v21 }
  0x1e   :  { %v472_v5 = vadd.f32 %v471_v15, %v147_v1  ;;  %v78_v29 = vadd.f32 %v77_v0, %v76_v16  ;;  %v87_v30 = vadd.f32 %v86_v25, %v85_v17  ;;  %v61_v21 = vrot.slane %v60_v28, 2 }
  0x1f   :  { %v461_v58 = vadd.f32 %v460_v51, %v182_v39  ;;  %v50_v19 = vrot.slane %v49_v56, 4  ;;  %v95_v31 = vrot.slane %v94_v4, 4  ;;  %v70_v53 = vrot.slane %v69_v12, 2 }
  0x20   :  { %v473_v9 = vadd.f32 %v472_v5, %v156_v14  ;;  %v79_v35 = vrot.slane %v78_v29, 2  ;;  %v88_v37 = vrot.slane %v87_v30, 2  ;;  %v62_v44 = vadd.f32 %v61_v21, %v60_v28 }
  0x21   :  { %v477_v7 = vmax.f32 %v461_v58, 1.0  ;;  %v51_v26 = vadd.f32 %v50_v19, %v49_v56  ;;  %v96_v39 = vadd.f32 %v95_v31, %v94_v4  ;;  %v71_v45 = vadd.f32 %v70_v53, %v69_v12 }
  0x22   :  { %v474_v33 = vadd.f32 %v473_v9, %v2170_v18  ;;  %v80_v46 = vadd.f32 %v79_v35, %v78_v29  ;;  %v89_v50 = vadd.f32 %v88_v37, %v87_v30  ;;  %v63_v60 = vrot.slane %v62_v44, 1 }
  0x23   :  { %1902 = vrcp.f32 %v477_v7  ;;  %vm484_vm1 = vweird.f32 %v477_v7  ;;  %v488_v22 = vand.u32 2147483647, %v477_v7  ;;  %v490_v36 = vand.u32 2147483648, %v477_v7 }
  0x24   :  { %v52_v34 = vrot.slane %v51_v26, 2  ;;  %v475_v41 = vadd.f32 %v474_v33, %v2173_v23  ;;  %v97_v58 = vrot.slane %v96_v39, 2  ;;  %v72_v3 = vrot.slane %v71_v45, 1 }
  0x25   :  { %v81_v56 = vrot.slane %v80_v46, 1  ;;  %vm2239_vm4 = vcmp.eq.f32.partialorder %v488_v22, 8.507059e+37  ;;  %v64_v17 = vadd.f32 %v63_v60, %v62_v44  ;;  %v90_v4 = vrot.slane %v89_v50, 1 }
  0x26   :  { %v53_v43 = vadd.f32 %v52_v34, %v51_v26  ;;  %v476_v51 = vadd.f32 %v475_v41, %v2189_v42  ;;  %v98_v15 = vadd.f32 %v97_v58, %v96_v39  ;;  %v491_v42 = vor.u32 1.1754944e-38, %v490_v36 }
  0x27   :  { %v73_v6 = vadd.f32 %v72_v3, %v71_v45  ;;  %v105_v0 = vadd.f32 %v104_v8, %v103_v40  ;;  %v112_v25 = vadd.f32 %v2185_v38, %v2093_v32  ;;  %v82_v9 = vadd.f32 %v81_v56, %v80_v46 }
  0x28   :  { %v54_v57 = vrot.slane %v53_v43, 1  ;;  %v2231_v27 = vmax.f32 %v476_v51, 1.0  ;;  %v2252_v28 = vmax.f32 %v64_v17, 1.0  ;;  %v178_v36 = vrot.slane %v2205_v59, 2 }
  0x29   :  { %v1903_v1 = vpop.eup %1902  ;;  %v91_v29 = vadd.f32 %v90_v4, %v89_v50  ;;  %v106_v30 = vrot.slane %v105_v0, 2  ;;  %v187_v32 = vrot.slane %v2222_v24, 2  ;;  %v113_v31 = vrot.slane %v112_v25, 4 }
  0x2a   :  { %v480_v14 = vmul.f32 %v1903_v1, %v477_v7  ;;  %vm485_vm2 = vweird.f32 %v1903_v1  ;;  %v55_v11 = vadd.f32 %v54_v57, %v53_v43  ;;  %1904 = vrcp.f32 %v2231_v27 }
  0x2b   :  { %vm2235_vm3 = vmor %vm484_vm1, %vm485_vm2  ;;  %v503_v19 = vand.u32 2147483647, %v2231_v27  ;;  %v505_v20 = vand.u32 2147483648, %v2231_v27  ;;  %v99_v7 = vrot.slane %v98_v15, 1  ;;  %vm499_vm5 = vweird.f32 %v2231_v27 }
  0x2c   :  { %v481_v18 = vsub.f32 1.0, %v480_v14  ;;  %v2250_v26 = vmax.f32 %v55_v11, 1.0  ;;  %v107_v21 = vadd.f32 %v106_v30, %v105_v0  ;;  %v2267_v53 = vmax.f32 %v73_v6, 1.0 }
  0x2d   :  { %v100_v38 = vadd.f32 %v99_v7, %v98_v15  ;;  %vm2263_vm6 = vcmp.eq.f32.partialorder %v503_v19, 8.507059e+37  ;;  %v506_v34 = vor.u32 1.1754944e-38, %v505_v20  ;;  %v114_v35 = vadd.f32 %v113_v31, %v112_v25 }
  0x2e   :  { %v482_v10 = vmul.f32 %v1903_v1, %v481_v18  ;;  %1906 = vrcp.f32 %v2250_v26  ;;  %v2270_v37 = vmax.f32 %v82_v9, 1.0  ;;  %v218_v39 = vand.u32 2147483648, %v2250_v26 }
  0x2f   :  { %1908 = vrcp.f32 %v2252_v28  ;;  %v108_v14 = vrot.slane %v107_v21, 1  ;;  %v2275_v41 = vmax.f32 %v91_v29, 1.0  ;;  %v216_v43 = vand.u32 2147483647, %v2250_v26 }
  0x30   :  { %v483_v5 = vadd.f32 %v1903_v1, %v482_v10  ;;  %v115_v44 = vrot.slane %v114_v35, 2  ;;  %v2278_v45 = vmax.f32 %v100_v38, 1.0  ;;  %v231_v46 = vand.u32 2147483647, %v2252_v28 }
  0x31   :  { %v109_v18 = vadd.f32 %v108_v14, %v107_v21  ;;  %v233_v51 = vand.u32 2147483648, %v2252_v28  ;;  %1910 = vrcp.f32 %v2267_v53  ;;  %vm212_vm8 = vweird.f32 %v2250_v26 }
  0x32   :  { %v487_v22 = vsel %vm2235_vm3, %v1903_v1, %v483_v5  ;;  %v1905_v1 = vpop.eup %1904  ;;  %v116_v57 = vadd.f32 %v115_v44, %v114_v35  ;;  %v219_v58 = vor.u32 1.1754944e-38, %v218_v39  ;;  %vm227_vm9 = vweird.f32 %v2252_v28 }
  0x33   :  { %v2256_v12 = vsel %vm2239_vm4, %v491_v42, %v487_v22  ;;  %v495_v40 = vmul.f32 %v1905_v1, %v2231_v27  ;;  %vm500_vm7 = vweird.f32 %v1905_v1  ;;  %vm2285_vm10 = vcmp.eq.f32.partialorder %v216_v43, 8.507059e+37 }
  0x34   :  { %559 = vrot.lane.b32.xlu0 %v2256_v12, %s1984_s22  ;;  %v1907_v60 = vpop.eup %1906  ;;  %vm2289_vm11 = vcmp.eq.f32.partialorder %v231_v46, 8.507059e+37  ;;  %vm242_vm12 = vweird.f32 %v2267_v53  ;;  %v246_v10 = vand.u32 2147483647, %v2267_v53  ;;  %vm2298_vm13 = vmor %vm499_vm5, %vm500_vm7  ;;  %v117_v23 = vrot.slane %v116_v57, 1 }
  0x35   :  { %v496_v50 = vsub.f32 1.0, %v495_v40  ;;  %v1909_v11 = vpop.eup %1908  ;;  %v2302_v16 = vmax.f32 %v109_v18, 1.0  ;;  %v208_v42 = vmul.f32 %v1907_v60, %v2250_v26  ;;  %v234_v17 = vor.u32 1.1754944e-38, %v233_v51 }
  0x36   :  { %vm213_vm14 = vweird.f32 %v1907_v60  ;;  %v223_v5 = vmul.f32 %v1909_v11, %v2252_v28  ;;  %v248_v19 = vand.u32 2147483648, %v2267_v53  ;;  %v118_v6 = vadd.f32 %v117_v23, %v116_v57 }
  0x37   :  { %v497_v3 = vmul.f32 %v1905_v1, %v496_v50  ;;  %v209_v20 = vsub.f32 1.0, %v208_v42  ;;  %vm228_vm15 = vweird.f32 %v1909_v11  ;;  %1912 = vrcp.f32 %v2270_v37  ;;  %v1911_v27 = vpop.eup %1910  ;;  %vm2328_vm2 = vmor %vm212_vm8, %vm213_vm14 }
  0x38   :  { %v224_v0 = vsub.f32 1.0, %v223_v5  ;;  %v261_v25 = vand.u32 2147483647, %v2270_v37  ;;  %v263_v22 = vand.u32 2147483648, %v2270_v37  ;;  %v238_v30 = vmul.f32 %v1911_v27, %v2267_v53  ;;  %vm2336_vm4 = vmor %vm227_vm9, %vm228_vm15 }
  0x39   :  { %v498_v4 = vadd.f32 %v1905_v1, %v497_v3  ;;  %v210_v29 = vmul.f32 %v1907_v60, %v209_v20  ;;  %vm2317_vm1 = vcmp.eq.f32.partialorder %v246_v10, 8.507059e+37  ;;  %v2323_v31 = vmax.f32 %v118_v6, 1.0 }
  0x3a   :  { %v225_v33 = vmul.f32 %v1909_v11, %v224_v0  ;;  %vm257_vm3 = vweird.f32 %v2270_v37  ;;  %v239_v39 = vsub.f32 1.0, %v238_v30  ;;  %vm243_vm5 = vweird.f32 %v1911_v27 }
  0x3b   :  { %v502_v7 = vsel %vm2298_vm13, %v1905_v1, %v498_v4  ;;  %v211_v1 = vadd.f32 %v1907_v60, %v210_v29  ;;  %1914 = vrcp.f32 %v2275_v41  ;;  %v264_v14 = vor.u32 1.1754944e-38, %v263_v22  ;;  %vm2355_vm8 = vmor %vm242_vm12, %vm243_vm5 }
  0x3c   :  { %v2314_v9 = vsel %vm2263_vm6, %v506_v34, %v502_v7  ;;  %v249_v34 = vor.u32 1.1754944e-38, %v248_v19  ;;  %v226_v26 = vadd.f32 %v1909_v11, %v225_v33  ;;  %vm2341_vm6 = vcmp.eq.f32.partialorder %v261_v25, 8.507059e+37 }
  0x3d   :  { %561 = vrot.lane.b32.xlu0 %v2314_v9, %s1984_s22  ;;  %v276_v43 = vand.u32 2147483647, %v2275_v41  ;;  %1916 = vrcp.f32 %v2278_v45  ;;  %v1913_v44 = vpop.eup %1912  ;;  %v215_v28 = vsel %vm2328_vm2, %v1907_v60, %v211_v1  ;;  %v240_v46 = vmul.f32 %v1911_v27, %v239_v39 }
  0x3e   :  { %vm272_vm7 = vweird.f32 %v2275_v41  ;;  %v278_v50 = vand.u32 2147483648, %v2275_v41  ;;  %v230_v18 = vsel %vm2336_vm4, %v1909_v11, %v226_v26  ;;  %v253_v57 = vmul.f32 %v1913_v44, %v2270_v37 }
  0x3f   :  { %vm287_vm9 = vweird.f32 %v2278_v45  ;;  %v291_v60 = vand.u32 2147483647, %v2278_v45  ;;  %v2364_v3 = vsel %vm2285_vm10, %v219_v58, %v215_v28  ;;  %v2368_v10 = vsel %vm2289_vm11, %v234_v17, %v230_v18 }
  0x40   :  { %3959 = vst [vmem:[#allocation2_spill] sm:$0xff] %v2368_v10  ;;  %v241_v11 = vadd.f32 %v1911_v27, %v240_v46  ;;  %vm258_vm13 = vweird.f32 %v1913_v44  ;;  %v254_v53 = vsub.f32 1.0, %v253_v57  ;;  %vm2370_vm12 = vcmp.eq.f32.partialorder %v276_v43, 8.507059e+37 }
  0x41   :  { %v293_v23 = vand.u32 2147483648, %v2278_v45  ;;  %1918 = vrcp.f32 %v2302_v16  ;;  %v1915_v42 = vpop.eup %1914  ;;  %v279_v56 = vor.u32 1.1754944e-38, %v278_v50  ;;  %v306_v8 = vand.u32 2147483647, %v2302_v16  ;;  %vm2393_vm14 = vmor %vm257_vm3, %vm258_vm13 }
  0x42   :  { %v245_v58 = vsel %vm2355_vm8, %v1911_v27, %v241_v11  ;;  %v308_v17 = vand.u32 2147483648, %v2302_v16  ;;  %v255_v5 = vmul.f32 %v1913_v44, %v254_v53  ;;  %v268_v19 = vmul.f32 %v1915_v42, %v2275_v41 }
  0x43   :  { %v1917_v4 = vpop.eup %1916  ;;  %vm2381_vm10 = vcmp.eq.f32.partialorder %v291_v60, 8.507059e+37  ;;  %vm302_vm11 = vweird.f32 %v2302_v16  ;;  %v2388_v20 = vsel %vm2317_vm1, %v249_v34, %v245_v58  ;;  %vm273_vm15 = vweird.f32 %v1915_v42 }
  0x44   :  { %3964 = vst [vmem:[#allocation3_spill] sm:$0xff] %v2388_v20  ;;  %v283_v7 = vmul.f32 %v1917_v4, %v2278_v45  ;;  %vm288_vm2 = vweird.f32 %v1917_v4  ;;  %v256_v0 = vadd.f32 %v1913_v44, %v255_v5  ;;  %v269_v25 = vsub.f32 1.0, %v268_v19  ;;  %vm2413_vm5 = vmor %vm272_vm7, %vm273_vm15 }
  0x45   :  { %v294_v22 = vor.u32 1.1754944e-38, %v293_v23  ;;  %1920 = vrcp.f32 %v2323_v31  ;;  %vm2399_vm4 = vcmp.eq.f32.partialorder %v306_v8, 8.507059e+37  ;;  %v309_v38 = vor.u32 1.1754944e-38, %v308_v17  ;;  %vm2422_vm13 = vmor %vm287_vm9, %vm288_vm2 }
  0x46   :  { %v284_v29 = vsub.f32 1.0, %v283_v7  ;;  %v321_v37 = vand.u32 2147483647, %v2323_v31  ;;  %v260_v33 = vsel %vm2393_vm14, %v1913_v44, %v256_v0  ;;  %v270_v34 = vmul.f32 %v1915_v42, %v269_v25 }
  0x47   :  { %v1919_v21 = vpop.eup %1918  ;;  %vm3888_vm1 = vcmask 1041409   ;;  %vm3887_vm3 = vcmask 1042434   ;;  %v2408_v1 = vsel %vm2341_vm6, %v264_v14, %v260_v33  ;;  %vm317_vm8 = vweird.f32 %v2323_v31 }
  0x48   :  { %3969 = vst [vmem:[#allocation4_spill] sm:$0xff] %v2408_v1  ;;  %v285_v39 = vmul.f32 %v1917_v4, %v284_v29  ;;  %v298_v26 = vmul.f32 %v1919_v21, %v2302_v16  ;;  %v271_v43 = vadd.f32 %v1915_v42, %v270_v34  ;;  %vm303_vm6 = vweird.f32 %v1919_v21 }
  0x49   :  { %v323_v41 = vand.u32 2147483648, %v2323_v31  ;;  %v526_v14 = vsel %vm3888_vm1, %v2368_v10, %v2364_v3  ;;  %vm2430_vm7 = vcmp.eq.f32.partialorder %v321_v37, 8.507059e+37  ;;  %vm3886_vm9 = vcmask 1043459   ;;  %vm2454_vm2 = vmor %vm302_vm11, %vm303_vm6 }
  0x4a   :  { %v286_v44 = vadd.f32 %v1917_v4, %v285_v39  ;;  %v299_v28 = vsub.f32 1.0, %v298_v26  ;;  %v528_v45 = vsel %vm3887_vm3, %v2388_v20, %v526_v14  ;;  %v275_v18 = vsel %vm2413_vm5, %v1915_v42, %v271_v43 }
  0x4b   :  { %v1921_v50 = vpop.eup %1920  ;;  %v530_v51 = vsel %vm3886_vm9, %v2408_v1, %v528_v45  ;;  %vm3885_vm14 = vcmask 1044484   ;;  %vm3884_vm15 = vcmask 1045509   ;;  %v2442_v57 = vsel %vm2370_vm12, %v279_v56, %v275_v18 }
  0x4c   :  { %3976 = vst [vmem:[#allocation5_spill] sm:$0xff] %v2442_v57  ;;  %v290_v60 = vsel %vm2422_vm13, %v1917_v4, %v286_v44  ;;  %v300_v11 = vmul.f32 %v1919_v21, %v299_v28  ;;  %v313_v53 = vmul.f32 %v1921_v50, %v2323_v31  ;;  %vm318_vm5 = vweird.f32 %v1921_v50 }
  0x4d   :  { %v2449_v23 = vsel %vm2381_vm10, %v294_v22, %v290_v60  ;;  %v324_v15 = vor.u32 1.1754944e-38, %v323_v41  ;;  %v532_v58 = vsel %vm3885_vm14, %v2442_v57, %v530_v51  ;;  %vm3883_vm12 = vcmask 1046534   ;;  %vm2487_vm10 = vmor %vm317_vm8, %vm318_vm5 }
  0x4e   :  { %3977 = vst [vmem:[#allocation6_spill] sm:$0xff] %v2449_v23  ;;  %v301_v56 = vadd.f32 %v1919_v21, %v300_v11  ;;  %v314_v8 = vsub.f32 1.0, %v313_v53  ;;  %v534_v17 = vsel %vm3884_vm15, %v2449_v23, %v532_v58  ;;  %v124_v4 = vrot.slane %v2199_v52, 2 }
  0x4f   :  { %v134_v16 = vadd.f32 %v133_v61, %v2192_v47  ;;  %v143_v5 = vadd.f32 %v142_v62, %v2194_v48  ;;  %v152_v19 = vadd.f32 %v151_v2, %v2196_v49  ;;  %v161_v7 = vadd.f32 %v160_v13, %v2201_v54 }
  0x50   :  { %v305_v6 = vsel %vm2454_vm2, %v1919_v21, %v301_v56  ;;  %v315_v27 = vmul.f32 %v1921_v50, %v314_v8  ;;  %v170_v47 = vadd.f32 %v169_v63, %v2203_v55  ;;  %v125_v49 = vadd.f32 %v124_v4, %v2199_v52 }
  0x51   :  { %v2482_v61 = vsel %vm2399_vm4, %v309_v38, %v305_v6  ;;  %v135_v62 = vrot.slane %v134_v16, 1  ;;  %v144_v2 = vrot.slane %v143_v5, 1  ;;  %vm3882_vm11 = vcmask 1047559  }
  0x52   :  { %3980 = vst [vmem:[#allocation7_spill] sm:$0xff] %v2482_v61  ;;  %v316_v54 = vadd.f32 %v1921_v50, %v315_v27  ;;  %v153_v13 = vrot.slane %v152_v19, 1  ;;  %v162_v0 = vrot.slane %v161_v7, 1  ;;  %v536_v55 = vsel %vm3883_vm12, %v2482_v61, %v534_v17 }
  0x53   :  { %v126_v63 = vrot.slane %v125_v49, 1  ;;  %v136_v25 = vadd.f32 %v135_v62, %v134_v16  ;;  %v145_v22 = vadd.f32 %v144_v2, %v143_v5  ;;  %v171_v29 = vrot.slane %v170_v47, 1 }
  0x54   :  { %v320_v31 = vsel %vm2487_vm10, %v1921_v50, %v316_v54  ;;  %v179_v52 = vadd.f32 %v178_v36, %v2205_v59  ;;  %v154_v37 = vadd.f32 %v153_v13, %v152_v19  ;;  %v188_v21 = vadd.f32 %v187_v32, %v2222_v24 }
  0x55   :  { %v2501_v30 = vsel %vm2430_vm7, %v324_v15, %v320_v31  ;;  %v127_v38 = vadd.f32 %v126_v63, %v125_v49  ;;  %v163_v34 = vadd.f32 %v162_v0, %v161_v7  ;;  %v200_v39 = vmax.f32 %v136_v25, 1.0 }
  0x56   :  { %3983 = vst [vmem:[#allocation8_spill] sm:$0xff] %v2501_v30  ;;  %v2508_v33 = vsel %vm3882_vm11, %v2501_v30, %v536_v55  ;;  %v180_v35 = vrot.slane %v179_v52, 1  ;;  %v189_v59 = vrot.slane %v188_v21, 1  ;;  %v2512_v26 = vmax.f32 %v145_v22, 1.0 }
  0x57   :  { %548 = vrot.lane.b32.xlu1 %v2508_v33, %s1984_s22  ;;  %v199_v36 = vmax.f32 %v127_v38, 1.0  ;;  %v172_v43 = vadd.f32 %v171_v29, %v170_v47  ;;  %1922 = vrcp.f32 %v200_v39  ;;  %v2514_v40 = vmax.f32 %v154_v37, 1.0 }
  0x58   :  { %v181_v24 = vadd.f32 %v180_v35, %v179_v52  ;;  %v2516_v32 = vmax.f32 %v163_v34, 1.0  ;;  %v190_v41 = vadd.f32 %v189_v59, %v188_v21  ;;  %vm347_vm4 = vweird.f32 %v200_v39  ;;  %v589_v35 = vld [vmem:[%s3878_s0 + $0xb0] sm:$0xff] }
  0x59   :  { %1924 = vrcp.f32 %v199_v36  ;;  %v2519_v14 = vmax.f32 %v172_v43, 1.0  ;;  %v338_v44 = vand.u32 2147483648, %v199_v36  ;;  %v353_v28 = vand.u32 2147483648, %v200_v39 }
  0x5a   :  { %1926 = vrcp.f32 %v2512_v26  ;;  %vm332_vm8 = vweird.f32 %v199_v36  ;;  %v336_v46 = vand.u32 2147483647, %v199_v36  ;;  %v351_v45 = vand.u32 2147483647, %v200_v39 }
  0x5b   :  { %1928 = vrcp.f32 %v2514_v40  ;;  %v2524_v18 = vmax.f32 %v181_v24, 1.0  ;;  %v366_v51 = vand.u32 2147483647, %v2512_v26  ;;  %v368_v60 = vand.u32 2147483648, %v2512_v26 }
  0x5c   :  { %1930 = vrcp.f32 %v2516_v32  ;;  %v2531_v53 = vmax.f32 %v190_v41, 1.0  ;;  %vm362_vm13 = vweird.f32 %v2512_v26  ;;  %v381_v15 = vand.u32 2147483647, %v2514_v40 }
  0x5d   :  { %v2522_v50 = vpop.eup %1922  ;;  %v339_v56 = vor.u32 1.1754944e-38, %v338_v44  ;;  %v354_v8 = vor.u32 1.1754944e-38, %v353_v28  ;;  %vm377_vm6 = vweird.f32 %v2514_v40  ;;  %vm2540_vm7 = vcmp.eq.f32.partialorder %v336_v46, 8.507059e+37  ;;  %v575_v28 = vld [vmem:[%s3878_s0 + $0x40] sm:$0xff] }
  0x5e   :  { %v343_v42 = vmul.f32 %v2522_v50, %v200_v39  ;;  %vm2544_vm2 = vcmp.eq.f32.partialorder %v351_v45, 8.507059e+37  ;;  %v383_v19 = vand.u32 2147483648, %v2514_v40  ;;  %vm392_vm5 = vweird.f32 %v2516_v32 }
  0x5f   :  { %v2529_v11 = vpop.eup %1924  ;;  %1932 = vrcp.f32 %v2519_v14  ;;  %vm348_vm10 = vweird.f32 %v2522_v50  ;;  %vm2554_vm0 = vcmp.eq.f32.partialorder %v366_v51, 8.507059e+37  ;;  %v369_v47 = vor.u32 1.1754944e-38, %v368_v60 }
  0x60   :  { %v328_v58 = vmul.f32 %v2529_v11, %v199_v36  ;;  %v2538_v17 = vpop.eup %1926  ;;  %v344_v16 = vsub.f32 1.0, %v343_v42  ;;  %vm333_vm11 = vweird.f32 %v2529_v11  ;;  %vm2560_vm12 = vcmp.eq.f32.partialorder %v381_v15, 8.507059e+37  ;;  %vm2573_vm14 = vmor %vm347_vm4, %vm348_vm10 }
  0x61   :  { %v358_v27 = vmul.f32 %v2538_v17, %v2512_v26  ;;  %v1929_v48 = vpop.eup %1928  ;;  %v396_v2 = vand.u32 2147483647, %v2516_v32  ;;  %v398_v54 = vand.u32 2147483648, %v2516_v32  ;;  %vm363_vm15 = vweird.f32 %v2538_v17  ;;  %vm2583_vm3 = vmor %vm332_vm8, %vm333_vm11 }
  0x62   :  { %v329_v6 = vsub.f32 1.0, %v328_v58  ;;  %v345_v49 = vmul.f32 %v2522_v50, %v344_v16  ;;  %v1931_v13 = vpop.eup %1930  ;;  %v373_v63 = vmul.f32 %v1929_v48, %v2514_v40  ;;  %v384_v31 = vor.u32 1.1754944e-38, %v383_v19  ;;  %vm2590_vm10 = vmor %vm362_vm13, %vm363_vm15 }
  0x63   :  { %v359_v55 = vsub.f32 1.0, %v358_v27  ;;  %v388_v29 = vmul.f32 %v1931_v13, %v2516_v32  ;;  %vm378_vm4 = vweird.f32 %v1929_v48  ;;  %vm393_vm1 = vweird.f32 %v1931_v13 }
  0x64   :  { %v330_v0 = vmul.f32 %v2529_v11, %v329_v6  ;;  %v346_v25 = vadd.f32 %v2522_v50, %v345_v49  ;;  %v374_v21 = vsub.f32 1.0, %v373_v63  ;;  %vm2594_vm9 = vcmp.eq.f32.partialorder %v396_v2, 8.507059e+37  ;;  %vm2609_vm15 = vmor %vm377_vm6, %vm378_vm4 }
  0x65   :  { %v360_v37 = vmul.f32 %v2538_v17, %v359_v55  ;;  %v1933_v34 = vpop.eup %1932  ;;  %v389_v39 = vsub.f32 1.0, %v388_v29  ;;  %1934 = vrcp.f32 %v2524_v18  ;;  %v399_v24 = vor.u32 1.1754944e-38, %v398_v54  ;;  %v569_v54 = vld [vmem:[%s3878_s0 + $0x10] sm:$0xff] }
  0x66   :  { %v331_v52 = vadd.f32 %v2529_v11, %v330_v0  ;;  %v375_v43 = vmul.f32 %v1929_v48, %v374_v21  ;;  %v411_v41 = vand.u32 2147483647, %v2519_v14  ;;  %v350_v44 = vsel %vm2573_vm14, %v2522_v50, %v346_v25  ;;  %v573_v21 = vld [vmem:[%s3878_s0 + $0x30] sm:$0xff] }
  0x67   :  { %v361_v36 = vadd.f32 %v2538_v17, %v360_v37  ;;  %v390_v46 = vmul.f32 %v1931_v13, %v389_v39  ;;  %v403_v45 = vmul.f32 %v1933_v34, %v2519_v14  ;;  %vm408_vm14 = vweird.f32 %v1933_v34 }
  0x68   :  { %v335_v26 = vsel %vm2583_vm3, %v2529_v11, %v331_v52  ;;  %v376_v60 = vadd.f32 %v1929_v48, %v375_v43  ;;  %vm2619_vm3 = vmor %vm392_vm5, %vm393_vm1  ;;  %v413_v40 = vand.u32 2147483648, %v2519_v14  ;;  %v426_v15 = vand.u32 2147483647, %v2524_v18  ;;  %v568_v43 = vld [vmem:[%s3878_s0 + $0x8] sm:$0xff] }
  0x69   :  { %v365_v51 = vsel %vm2590_vm10, %v2538_v17, %v361_v36  ;;  %v391_v50 = vadd.f32 %v1931_v13, %v390_v46  ;;  %v404_v42 = vsub.f32 1.0, %v403_v45  ;;  %1936 = vrcp.f32 %v2531_v53 }
  0x6a   :  { %v2628_v58 = vsel %vm2540_vm7, %v339_v56, %v335_v26  ;;  %v2632_v32 = vsel %vm2544_vm2, %v354_v8, %v350_v44  ;;  %v380_v17 = vsel %vm2609_vm15, %v1929_v48, %v376_v60  ;;  %vm2636_vm1 = vcmp.eq.f32.partialorder %v411_v41, 8.507059e+37  ;;  %v567_v48 = vld [vmem:[%s3878_s0] sm:$0xff] }
  0x6b   :  { %4004 = vst [vmem:[#allocation9_spill] sm:$0xff] %v2628_v58  ;;  %v1935_v19 = vpop.eup %1934  ;;  %v2642_v6 = vsel %vm2554_vm0, %v369_v47, %v365_v51  ;;  %v395_v56 = vsel %vm2619_vm3, %v1931_v13, %v391_v50  ;;  %v405_v4 = vmul.f32 %v1933_v34, %v404_v42  ;;  %v428_v5 = vand.u32 2147483648, %v2524_v18  ;;  %v572_v51 = vld [vmem:[%s3878_s0 + $0x28] sm:$0xff] }
  0x6c   :  { %4005 = vst [vmem:[#allocation10_spill] sm:$0xff] %v2632_v32  ;;  %v2649_v8 = vsel %vm2560_vm12, %v384_v31, %v380_v17  ;;  %vm4010_vm11 = vweird.f32 %v2519_v14  ;;  %v414_v7 = vor.u32 1.1754944e-38, %v413_v40  ;;  %v418_v47 = vmul.f32 %v1935_v19, %v2524_v18  ;;  %v571_v31 = vld [vmem:[%s3878_s0 + $0x20] sm:$0xff] }
  0x6d   :  { %4008 = vst [vmem:[#allocation11_spill] sm:$0xff] %v2642_v6  ;;  %vm2654_vm8 = vmor %vm4010_vm11, %vm408_vm14  ;;  %vm422_vm0 = vweird.f32 %v2524_v18  ;;  %v2665_v49 = vsel %vm2594_vm9, %v399_v24, %v395_v56  ;;  %v406_v62 = vadd.f32 %v1933_v34, %v405_v4  ;;  %vm2667_vm12 = vcmp.eq.f32.partialorder %v426_v15, 8.507059e+37  ;;  %v570_v18 = vld [vmem:[%s3878_s0 + $0x18] sm:$0xff] }
  0x6e   :  { %4009 = vst [vmem:[#allocation12_spill] sm:$0xff] %v2649_v8  ;;  %vm4016_vm13 = vcmask 1041409   ;;  %v419_v13 = vsub.f32 1.0, %v418_v47  ;;  %vm423_vm6 = vweird.f32 %v1935_v19  ;;  %vm4017_vm7 = vcmask 1042434   ;;  %v574_v47 = vld [vmem:[%s3878_s0 + $0x38] sm:$0xff] }
  0x6f   :  { %4013 = vst [vmem:[#allocation13_spill] sm:$0xff] %v2665_v49  ;;  %v539_v2 = vsel %vm4016_vm13, %v2632_v32, %v2628_v58  ;;  %vm599_vm9 = vcmask 64512   ;;  %v1937_v55 = vpop.eup %1936  ;;  %v410_v63 = vsel %vm2654_vm8, %v1933_v34, %v406_v62  ;;  %v429_v25 = vor.u32 1.1754944e-38, %v428_v5  ;;  %vm2702_vm5 = vmor %vm422_vm0, %vm423_vm6 }
  0x70   :  { %v540_v0 = vsel %vm4017_vm7, %v2642_v6, %v539_v2  ;;  %vm4018_vm2 = vcmask 1043459   ;;  %v2687_v29 = vsel %vm599_vm9, %v567_v48, 0.0  ;;  %v2691_v52 = vsel %vm2636_vm1, %v414_v7, %v410_v63  ;;  %v584_v63 = vld [vmem:[%s3878_s0 + $0x88] sm:$0xff] }
  0x71   :  { %v541_v22 = vsel %vm4018_vm2, %v2649_v8, %v540_v0  ;;  %4019 = vst [vmem:[#allocation14_spill] sm:$0xff] %v2691_v52  ;;  %v420_v38 = vmul.f32 %v1935_v19, %v419_v13  ;;  %v433_v37 = vmul.f32 %v1937_v55, %v2531_v53  ;;  %v2698_v34 = vsel %vm599_vm9, %v569_v54, 0.0  ;;  %v579_v54 = vld [vmem:[%s3878_s0 + $0x60] sm:$0xff]  ;;  %v581_v13 = vld [vmem:[%s3878_s0 + $0x70] sm:$0xff]  ;;  %vm4030_vm6 = vmmov %vm4018_vm2 }
  0x72   :  { %vm437_vm4 = vweird.f32 %v2531_v53  ;;  %v441_v39 = vand.u32 2147483647, %v2531_v53  ;;  %v443_v59 = vand.u32 2147483648, %v2531_v53  ;;  %vm4022_vm10 = vcmask 1044484   ;;  %v583_v0 = vld [vmem:[%s3878_s0 + $0x80] sm:$0xff] }
  0x73   :  { %v542_v36 = vsel %vm4022_vm10, %v2665_v49, %v541_v22  ;;  %v421_v24 = vadd.f32 %v1935_v19, %v420_v38  ;;  %v434_v41 = vsub.f32 1.0, %v433_v37  ;;  %vm438_vm15 = vweird.f32 %v1937_v55  ;;  %v576_v37 = vld [vmem:[%s3878_s0 + $0x48] sm:$0xff] }
  0x74   :  { %v2718_v26 = vsel %vm599_vm9, %v571_v31, 0.0  ;;  %vm4023_vm3 = vcmask 1045509   ;;  %v2726_v46 = vsel %vm599_vm9, %v573_v21, 0.0  ;;  %v744_v45 = vadd.f32 %v2698_v34, %v2687_v29  ;;  %vm439_vm14 = vmor %vm437_vm4, %vm438_vm15  ;;  %v587_v31 = vld [vmem:[%s3878_s0 + $0xa0] sm:$0xff]  ;;  %v586_v21 = vld [vmem:[%s3878_s0 + $0x98] sm:$0xff] }
  0x75   :  { %v543_v44 = vsel %vm4023_vm3, %v2691_v52, %v542_v36  ;;  %v425_v60 = vsel %vm2702_vm5, %v1935_v19, %v421_v24  ;;  %v435_v11 = vmul.f32 %v1937_v55, %v434_v41  ;;  %v2736_v40 = vsel %vm599_vm9, %v568_v43, 0.0  ;;  %v577_v19 = vld [vmem:[%s3878_s0 + $0x50] sm:$0xff]  ;;  %v591_v43 = vld [vmem:[%s3878_s0 + $0xc0] sm:$0xff]  ;;  %vm4032_vm2 = vmmov %vm4023_vm3 }
  0x76   :  { %v2739_v50 = vsel %vm599_vm9, %v570_v18, 0.0  ;;  %v2743_v42 = vsel %vm2667_vm12, %v429_v25, %v425_v60  ;;  %vm442_vm1 = vcmp.eq.f32.partialorder %v441_v39, 8.507059e+37  ;;  %v444_v15 = vor.u32 1.1754944e-38, %v443_v59  ;;  %v585_v25 = vld [vmem:[%s3878_s0 + $0x90] sm:$0xff]  ;;  %v592_v60 = vld [vmem:[%s3878_s0 + $0xc8] sm:$0xff]  ;;  %vm4028_vm12 = vmmov %vm4016_vm13 }
  0x77   :  { %4024 = vst [vmem:[#allocation15_spill] sm:$0xff] %v2743_v42  ;;  %v745_v17 = vadd.f32 %v744_v45, %v2718_v26  ;;  %v436_v16 = vadd.f32 %v1937_v55, %v435_v11  ;;  %v2752_v56 = vsel %vm599_vm9, %v575_v28, 0.0  ;;  %vm4025_vm11 = vcmask 1046534   ;;  %v593_v18 = vld [vmem:[%s3878_s0 + $0xd0] sm:$0xff]  ;;  %v588_v45 = vld [vmem:[%s3878_s0 + $0xa8] sm:$0xff]  ;;  %vm4029_vm13 = vmmov %vm4017_vm7 }
  0x78   :  { %v544_v4 = vsel %vm4025_vm11, %v2743_v42, %v543_v44  ;;  %v2758_v53 = vsel %vm599_vm9, %v572_v51, 0.0  ;;  %v759_v27 = vadd.f32 %v2739_v50, %v2736_v40  ;;  %v2768_v62 = vsel %vm599_vm9, %v577_v19, 0.0  ;;  %v590_v51 = vld [vmem:[%s3878_s0 + $0xb8] sm:$0xff]  ;;  %v580_v42 = vld [vmem:[%s3878_s0 + $0x68] sm:$0xff]  ;;  %vm4031_vm7 = vmmov %vm4022_vm10 }
  0x79   :  { %v746_v5 = vadd.f32 %v745_v17, %v2726_v46  ;;  %v440_v7 = vsel %vm439_vm14, %v1937_v55, %v436_v16  ;;  %vm4027_vm8 = vcmask 1047559   ;;  %v2794_v22 = vsel %vm599_vm9, %v574_v47, 0.0  ;;  %v594_v19 = vld [vmem:[%s3878_s0 + $0xd8] sm:$0xff]  ;;  %vm4033_vm5 = vmmov %vm4025_vm11 }
  0x7a   :  { %v2765_v48 = vsel %vm442_vm1, %v444_v15, %v440_v7  ;;  %v760_v55 = vadd.f32 %v759_v27, %v2758_v53  ;;  %v2810_v39 = vsel %vm599_vm9, %v579_v54, 0.0  ;;  %v2813_v59 = vsel %vm599_vm9, %v581_v13, 0.0  ;;  %vm4034_vm4 = vmmov %vm4027_vm8 }
  0x7b   :  { %4026 = vst [vmem:[#allocation16_spill] sm:$0xff] %v2765_v48  ;;  %v747_v14 = vadd.f32 %v746_v5, %v2752_v56  ;;  %v2773_v2 = vsel %vm4027_vm8, %v2765_v48, %v544_v4  ;;  %v672_v36 = vsel %vm599_vm9, %v583_v0, 0.0  ;;  %v673_v24 = vsel %vm599_vm9, %v584_v63, 0.0  ;;  %v595_v4 = vld [vmem:[%s3878_s0 + $0xe0] sm:$0xff]  ;;  %v596_v5 = vld [vmem:[%s3878_s0 + $0xe8] sm:$0xff]  ;;  %v578_v63 = vld [vmem:[%s3878_s0 + $0x58] sm:$0xff] }
  0x7c   :  { %550 = vrot.lane.b32.xlu1 %v2773_v2, %s1984_s22  ;;  %v681_v41 = vsel %vm599_vm9, %v585_v25, 0.0  ;;  %v682_v44 = vsel %vm599_vm9, %v586_v21, 0.0  ;;  %v761_v28 = vadd.f32 %v760_v55, %v2794_v22  ;;  %v2835_v11 = vadd.f32 %v673_v24, %v672_v36  ;;  %vm4035_vm10 = vmmov %vm4028_vm12  ;;  %s1987_s22 = smov 64  }
  0x7d   :  { %v748_v38 = vadd.f32 %v747_v14, %v2768_v62  ;;  %v2837_v15 = vadd.f32 %v682_v44, %v681_v41  ;;  %v690_v17 = vsel %vm599_vm9, %v587_v31, 0.0  ;;  %v2841_v16 = vsel %vm599_vm9, %v576_v37, 0.0  ;;  %v598_v37 = vld [vmem:[%s3878_s0 + $0xf8] sm:$0xff]  ;;  %vm4036_vm15 = vmmov %vm4029_vm13 }
  0x7e   :  { %v691_v27 = vsel %vm599_vm9, %v588_v45, 0.0  ;;  %v699_v7 = vsel %vm599_vm9, %v589_v35, 0.0  ;;  %v700_v47 = vsel %vm599_vm9, %v590_v51, 0.0  ;;  %v708_v0 = vsel %vm599_vm9, %v591_v43, 0.0  ;;  %vm4037_vm3 = vmmov %vm4030_vm6 }
  0x7f   :  { %v749_v14 = vadd.f32 %v748_v38, %v2810_v39  ;;  %v2856_v54 = vadd.f32 %v691_v27, %v690_v17  ;;  %v2858_v13 = vadd.f32 %v700_v47, %v699_v7  ;;  %v709_v55 = vsel %vm599_vm9, %v592_v60, 0.0  ;;  %v597_v38 = vld [vmem:[%s3878_s0 + $0xf0] sm:$0xff]  ;;  %vm4038_vm14 = vmmov %vm4031_vm7 }
  0x80   :  { %v2865_v25 = vadd.f32 %v709_v55, %v708_v0  ;;  %v762_v31 = vadd.f32 %v761_v28, %v2841_v16  ;;  %v717_v21 = vsel %vm599_vm9, %v593_v18, 0.0  ;;  %v718_v35 = vsel %vm599_vm9, %v594_v19, 0.0  ;;  %vm4039_vm1 = vmmov %vm4032_vm2 }
  0x81   :  { %v726_v43 = vsel %vm599_vm9, %v595_v4, 0.0  ;;  %v727_v45 = vsel %vm599_vm9, %v596_v5, 0.0  ;;  %v2878_v51 = vadd.f32 %v718_v35, %v717_v21  ;;  %v750_v28 = vadd.f32 %v749_v14, %v2813_v59  ;;  %v582_v4 = vld [vmem:[%s3878_s0 + $0x78] sm:$0xff]  ;;  %s1985_s0 = smov 8   ;;  %vm4040_vm11 = vmmov %vm4033_vm5 }
  0x82   :  { %v2880_v60 = vadd.f32 %v727_v45, %v726_v43  ;;  %v646_v48 = vsel %vm599_vm9, %v578_v63, 0.0  ;;  %v735_v18 = vsel %vm599_vm9, %v597_v38, 0.0  ;;  %v736_v19 = vsel %vm599_vm9, %v598_v37, 0.0 }
  0x83   :  { %v2889_v52 = vadd.f32 %v736_v19, %v735_v18  ;;  %v763_v5 = vadd.f32 %v762_v31, %v646_v48  ;;  %v751_v49 = vadd.f32 %v750_v28, %v672_v36  ;;  %v655_v14 = vsel %vm599_vm9, %v580_v42, 0.0 }
  0x84   :  { %v664_v63 = vsel %vm599_vm9, %v582_v4, 0.0  ;;  %vm554_vm0 = vcmask 31744   ;;  %v656_v28 = vadd.f32 %v655_v14, %v2810_v39  ;;  %vm884_vm8 = vcmask 130048  }
  0x85   :  { %v752_v8 = vadd.f32 %v751_v49, %v681_v41  ;;  %v764_v6 = vadd.f32 %v763_v5, %v655_v14 }
  0x87   :  { %v753_v30 = vadd.f32 %v752_v8, %v690_v17  ;;  %v765_v32 = vadd.f32 %v764_v6, %v664_v63 }
  0x89   :  { %v754_v58 = vadd.f32 %v753_v30, %v699_v7  ;;  %v766_v38 = vadd.f32 %v765_v32, %v673_v24  ;;  %v602_v30 = vadd.f32 %v2736_v40, %v2687_v29 }
  0x8b   :  { %v755_v61 = vadd.f32 %v754_v58, %v708_v0  ;;  %v767_v37 = vadd.f32 %v766_v38, %v682_v44  ;;  %v603_v8 = vrot.slane %v602_v30, 4 }
  0x8d   :  { %v756_v23 = vadd.f32 %v755_v61, %v717_v21  ;;  %v768_v57 = vadd.f32 %v767_v37, %v691_v27  ;;  %v611_v61 = vadd.f32 %v2739_v50, %v2698_v34  ;;  %v604_v17 = vadd.f32 %v603_v8, %v602_v30 }
  0x8f   :  { %v757_v1 = vadd.f32 %v756_v23, %v726_v43  ;;  %v769_v20 = vadd.f32 %v768_v57, %v700_v47  ;;  %v620_v57 = vadd.f32 %v2758_v53, %v2718_v26  ;;  %v605_v27 = vrot.slane %v604_v17, 2 }
  0x90   :  { %v629_v53 = vadd.f32 %v2794_v22, %v2726_v46  ;;  %v638_v47 = vadd.f32 %v2841_v16, %v2752_v56  ;;  %v657_v56 = vrot.slane %v656_v28, 4 }
  0x91   :  { %v758_v10 = vadd.f32 %v757_v1, %v735_v18  ;;  %v770_v31 = vadd.f32 %v769_v20, %v709_v55  ;;  %v621_v32 = vrot.slane %v620_v57, 4  ;;  %v606_v7 = vadd.f32 %v605_v27, %v604_v17 }
  0x92   :  { %v630_v21 = vrot.slane %v629_v53, 4 }
  0x93   :  { %v771_v41 = vadd.f32 %v770_v31, %v718_v35  ;;  %v622_v44 = vadd.f32 %v621_v32, %v620_v57  ;;  %v647_v35 = vadd.f32 %v646_v48, %v2768_v62  ;;  %v607_v18 = vrot.slane %v606_v7, 1 }
  0x94   :  { %v631_v46 = vadd.f32 %v630_v21, %v629_v53  ;;  %v665_v48 = vadd.f32 %v664_v63, %v2813_v59  ;;  %v658_v31 = vadd.f32 %v657_v56, %v656_v28  ;;  %v675_v21 = vrot.slane %v2835_v11, 4 }
  0x95   :  { %v772_v6 = vadd.f32 %v771_v41, %v727_v45  ;;  %v623_v40 = vrot.slane %v622_v44, 2  ;;  %v639_v45 = vrot.slane %v638_v47, 4  ;;  %v648_v5 = vrot.slane %v647_v35, 4 }
  0x96   :  { %v632_v62 = vrot.slane %v631_v46, 2  ;;  %v702_v56 = vrot.slane %v2858_v13, 4 }
  0x97   :  { %v773_v1 = vadd.f32 %v772_v6, %v736_v19  ;;  %v624_v50 = vadd.f32 %v623_v40, %v622_v44  ;;  %v640_v22 = vadd.f32 %v639_v45, %v638_v47  ;;  %v659_v6 = vrot.slane %v658_v31, 2  ;;  %v881_v44 = vld [vmem:[%s3879_s2 + $0x8] sm:$0xff] }
  0x98   :  { %v633_v14 = vadd.f32 %v632_v62, %v631_v46  ;;  %905 = vmatpush.msra.mxu0 %v881_v44 }
  0x99   :  { %v625_v55 = vrot.slane %v624_v50, 1  ;;  %v641_v37 = vrot.slane %v640_v22, 2  ;;  %v660_v63 = vadd.f32 %v659_v6, %v658_v31  ;;  %v729_v31 = vrot.slane %v2880_v60, 4 }
  0x9b   :  { %v626_v16 = vadd.f32 %v625_v55, %v624_v50 }
  0xa6   :  { %v560_v36 = vpop.permute.xlu0 %559 }
  0xa7   :  { %v565_v49 = vsel %vm554_vm0, %v2256_v12, %v560_v36  ;;  %v608_v36 = vadd.f32 %v607_v18, %v606_v7 }
  0xa8   :  { %v822_v42 = vmul.f32 %v758_v10, %v565_v49  ;;  %v612_v10 = vrot.slane %v611_v61, 4  ;;  %v666_v49 = vrot.slane %v665_v48, 4 }
  0xaa   :  { %872 = vrot.lane.b32.xlu2 %v822_v42, %s1985_s0  ;;  %v613_v24 = vadd.f32 %v612_v10, %v611_v61  ;;  %v642_v42 = vadd.f32 %v641_v37, %v640_v22  ;;  %v667_v30 = vadd.f32 %v666_v49, %v665_v48  ;;  %v684_v22 = vrot.slane %v2837_v15, 4 }
  0xab   :  { %v711_v37 = vrot.slane %v2865_v25, 4 }
  0xac   :  { %v614_v29 = vrot.slane %v613_v24, 2  ;;  %v685_v6 = vadd.f32 %v684_v22, %v2837_v15 }
  0xae   :  { %v615_v34 = vadd.f32 %v614_v29, %v613_v24  ;;  %v661_v29 = vrot.slane %v660_v63, 1 }
  0xaf   :  { %v562_v20 = vpop.permute.xlu0 %561 }
  0xb0   :  { %v566_v23 = vsel %vm554_vm0, %v2314_v9, %v562_v20  ;;  %v616_v26 = vrot.slane %v615_v34, 1  ;;  %v643_v20 = vrot.slane %v642_v42, 1  ;;  %v662_v47 = vadd.f32 %v661_v29, %v660_v63 }
  0xb1   :  { %v823_v58 = vmul.f32 %v773_v1, %v566_v23  ;;  %v634_v1 = vrot.slane %v633_v14, 1  ;;  %v686_v63 = vrot.slane %v685_v6, 2 }
  0xb2   :  { %v617_v19 = vadd.f32 %v616_v26, %v615_v34  ;;  %v644_v8 = vadd.f32 %v643_v20, %v642_v42  ;;  %v880_v42 = vld [vmem:[%s3879_s2] sm:$0xff]  ;;  %v730_v20 = vadd.f32 %v729_v31, %v2880_v60 }
  0xb3   :  { %874 = vrot.lane.b32.xlu2 %v823_v58, %s1985_s0  ;;  %v668_v58 = vrot.slane %v667_v30, 2  ;;  %v635_v32 = vadd.f32 %v634_v1, %v633_v14  ;;  %v676_v14 = vadd.f32 %v675_v21, %v2835_v11  ;;  %906 = vmatpush.msra.mxu0 %v880_v42  ;;  %v712_v1 = vadd.f32 %v711_v37, %v2865_v25 }
  0xb5   :  { %v669_v40 = vadd.f32 %v668_v58, %v667_v30 }
  0xc9   :  { %v549_v0 = vpop.permute.xlu1 %548 }
  0xca   :  { %v2913_v43 = vsel %vm554_vm0, %v2508_v33, %v549_v0  ;;  %v649_v33 = vadd.f32 %v648_v5, %v647_v35  ;;  %v670_v0 = vrot.slane %v669_v40, 1  ;;  %v693_v5 = vrot.slane %v2856_v54, 4 }
  0xcb   :  { %v776_v4 = vrot.slane %v2913_v43, 1  ;;  %v777_v38 = vrot.slane %v2913_v43, 2  ;;  %v778_v61 = vrot.slane %v2913_v43, 3  ;;  %v806_v23 = vmul.f32 %v608_v36, %v2913_v43 }
  0xcc   :  { %v650_v41 = vrot.slane %v649_v33, 2  ;;  %v779_v24 = vrot.slane %v2913_v43, 4  ;;  %v780_v27 = vrot.slane %v2913_v43, 5  ;;  %v781_v34 = vrot.slane %v2913_v43, 6 }
  0xcd   :  { %v807_v39 = vmul.f32 %v776_v4, %v617_v19  ;;  %v808_v57 = vmul.f32 %v777_v38, %v626_v16  ;;  %v809_v50 = vmul.f32 %v778_v61, %v635_v32  ;;  %v782_v55 = vrot.slane %v2913_v43, 7 }
  0xce   :  { %v651_v59 = vadd.f32 %v650_v41, %v649_v33  ;;  %v810_v7 = vmul.f32 %v779_v24, %v644_v8  ;;  %v671_v18 = vadd.f32 %v670_v0, %v669_v40  ;;  %v812_v4 = vmul.f32 %v781_v34, %v662_v47 }
  0xcf   :  { %v840_v10 = vrot.slane %v807_v39, 7  ;;  %v842_v26 = vrot.slane %v808_v57, 6  ;;  %v844_v45 = vrot.slane %v809_v50, 5  ;;  %v720_v33 = vrot.slane %v2878_v51, 4 }
  0xd0   :  { %v652_v17 = vrot.slane %v651_v59, 1  ;;  %v846_v28 = vrot.slane %v810_v7, 4  ;;  %v813_v43 = vmul.f32 %v782_v55, %v671_v18  ;;  %v850_v62 = vrot.slane %v812_v4, 2 }
  0xd1   :  { %v841_v35 = vsel %vm4028_vm12, %v840_v10, %v806_v23  ;;  %v738_v36 = vrot.slane %v2889_v52, 4  ;;  %v694_v30 = vadd.f32 %v693_v5, %v2856_v54  ;;  %v703_v61 = vadd.f32 %v702_v56, %v2858_v13  ;;  %vm4041_vm12 = vmmov %vm4034_vm4 }
  0xd2   :  { %v653_v53 = vadd.f32 %v652_v17, %v651_v59  ;;  %v843_v46 = vsel %vm4029_vm13, %v842_v26, %v841_v35  ;;  %v852_v39 = vrot.slane %v813_v43, 1  ;;  %v721_v11 = vadd.f32 %v720_v33, %v2878_v51 }
  0xd3   :  { %v845_v16 = vsel %vm4030_vm6, %v844_v45, %v843_v46  ;;  %v739_v23 = vadd.f32 %v738_v36, %v2889_v52  ;;  %v677_v59 = vrot.slane %v676_v14, 2  ;;  %v695_v58 = vrot.slane %v694_v30, 2 }
  0xd4   :  { %v811_v19 = vmul.f32 %v780_v27, %v653_v53  ;;  %v847_v38 = vsel %vm4031_vm7, %v846_v28, %v845_v16  ;;  %v704_v15 = vrot.slane %v703_v61, 2  ;;  %v713_v10 = vrot.slane %v712_v1, 2 }
  0xd5   :  { %v722_v54 = vrot.slane %v721_v11, 2  ;;  %v731_v32 = vrot.slane %v730_v20, 2  ;;  %v740_v13 = vrot.slane %v739_v23, 2  ;;  %v687_v8 = vadd.f32 %v686_v63, %v685_v6 }
  0xd6   :  { %v848_v48 = vrot.slane %v811_v19, 3  ;;  %v696_v24 = vadd.f32 %v695_v58, %v694_v30  ;;  %v705_v44 = vadd.f32 %v704_v15, %v703_v61  ;;  %v678_v17 = vadd.f32 %v677_v59, %v676_v14 }
  0xd7   :  { %v714_v29 = vadd.f32 %v713_v10, %v712_v1  ;;  %v723_v25 = vadd.f32 %v722_v54, %v721_v11  ;;  %v732_v40 = vadd.f32 %v731_v32, %v730_v20  ;;  %v741_v51 = vadd.f32 %v740_v13, %v739_v23 }
  0xd8   :  { %v849_v49 = vsel %vm4032_vm2, %v848_v48, %v847_v38  ;;  %v688_v27 = vrot.slane %v687_v8, 1  ;;  %v697_v60 = vrot.slane %v696_v24, 1  ;;  %v706_v34 = vrot.slane %v705_v44, 1 }
  0xd9   :  { %v851_v41 = vsel %vm4033_vm5, %v850_v62, %v849_v49  ;;  %v679_v52 = vrot.slane %v678_v17, 1  ;;  %v715_v50 = vrot.slane %v714_v29, 1  ;;  %v724_v7 = vrot.slane %v723_v25, 1 }
  0xda   :  { %v2950_v57 = vsel %vm4034_vm4, %v852_v39, %v851_v41  ;;  %v733_v26 = vrot.slane %v732_v40, 1  ;;  %v742_v53 = vrot.slane %v741_v51, 1  ;;  %v698_v47 = vadd.f32 %v697_v60, %v696_v24  ;;  %v1897_v24 = vld [vmem:[%s3879_s2 + $0x10] ss:$0 sm:$0xff] }
  0xdb   :  { %v707_v0 = vadd.f32 %v706_v34, %v705_v44  ;;  %v680_v21 = vadd.f32 %v679_v52, %v678_v17  ;;  %v689_v35 = vadd.f32 %v688_v27, %v687_v8  ;;  %v716_v45 = vadd.f32 %v715_v50, %v714_v29  ;;  %v967_v44 = vld [vmem:[%s3879_s2 + $0xd8] sm:$0xff]  ;;  %v965_v17 = vld [vmem:[%s3879_s2 + $0xc8] sm:$0xff]  ;;  %v962_v50 = vld [vmem:[%s3879_s2 + $0xb0] sm:$0xff] }
  0xdc   :  { %v725_v18 = vadd.f32 %v724_v7, %v723_v25  ;;  %v734_v19 = vadd.f32 %v733_v26, %v732_v40  ;;  %v743_v5 = vadd.f32 %v742_v53, %v741_v51  ;;  %v1986_v8 = vmov 16.0   ;;  %984 = vmatpush.msra.mxu1 %v967_v44  ;;  %v964_v40 = vld [vmem:[%s3879_s2 + $0xc0] sm:$0xff]  ;;  %v963_v27 = vld [vmem:[%s3879_s2 + $0xb8] sm:$0xff]  ;;  %v961_v26 = vld [vmem:[%s3879_s2 + $0xa8] sm:$0xff] }
  0xdd   :  { %1938 = vrcp.f32 %v1986_v8 }
  0xe3   :  { %v1939_v25 = vpop.eup %1938 }
  0xe4   :  { %v926_v52 = vmul.f32 16.0, %v1939_v25  ;;  %vm930_vm6 = vweird.f32 %v1939_v25 }
  0xee   :  { %v551_v55 = vpop.permute.xlu1 %550 }
  0xef   :  { %v556_v28 = vsel %vm554_vm0, %v2773_v2, %v551_v55 }
  0xf0   :  { %v783_v4 = vrot.slane %v556_v28, 1  ;;  %v784_v46 = vrot.slane %v556_v28, 2  ;;  %v785_v22 = vrot.slane %v556_v28, 3  ;;  %v786_v56 = vrot.slane %v556_v28, 4 }
  0xf1   :  { %v787_v16 = vrot.slane %v556_v28, 5  ;;  %v788_v43 = vrot.slane %v556_v28, 6  ;;  %v789_v38 = vrot.slane %v556_v28, 7  ;;  %v814_v48 = vmul.f32 %v680_v21, %v556_v28  ;;  %v960_v21 = vld [vmem:[%s3879_s2 + $0xa0] sm:$0xff] }
  0xf2   :  { %v815_v62 = vmul.f32 %v783_v4, %v689_v35  ;;  %v816_v37 = vmul.f32 %v784_v46, %v698_v47  ;;  %v817_v33 = vmul.f32 %v785_v22, %v707_v0  ;;  %v818_v31 = vmul.f32 %v786_v56, %v716_v45 }
  0xf3   :  { %v819_v36 = vmul.f32 %v787_v16, %v725_v18  ;;  %v820_v49 = vmul.f32 %v788_v43, %v734_v19  ;;  %v821_v14 = vmul.f32 %v789_v38, %v743_v5  ;;  %v927_v0 = vsub.f32 1.0, %v926_v52 }
  0xf4   :  { %v854_v39 = vrot.slane %v815_v62, 7  ;;  %v856_v2 = vrot.slane %v816_v37, 6  ;;  %v858_v42 = vrot.slane %v817_v33, 5  ;;  %v860_v41 = vrot.slane %v818_v31, 4 }
  0xf5   :  { %v862_v30 = vrot.slane %v819_v36, 3  ;;  %v864_v1 = vrot.slane %v820_v49, 2  ;;  %v866_v20 = vrot.slane %v821_v14, 1  ;;  %v928_v45 = vmul.f32 %v1939_v25, %v927_v0 }
  0xf6   :  { %v855_v6 = vsel %vm4035_vm10, %v854_v39, %v814_v48 }
  0xf7   :  { %v857_v61 = vsel %vm4036_vm15, %v856_v2, %v855_v6  ;;  %v929_v19 = vadd.f32 %v1939_v25, %v928_v45 }
  0xf8   :  { %v859_v11 = vsel %vm4037_vm3, %v858_v42, %v857_v61 }
  0xf9   :  { %v861_v23 = vsel %vm4038_vm14, %v860_v41, %v859_v11  ;;  %v2997_v22 = vsel %vm930_vm6, %v1939_v25, %v929_v19 }
  0xfa   :  { %v863_v59 = vsel %vm4039_vm1, %v862_v30, %v861_v23 }
  0xfb   :  { %v865_v63 = vsel %vm4040_vm11, %v864_v1, %v863_v59 }
  0xfc   :  { %v867_v58 = vsel %vm4041_vm12, %v866_v20, %v865_v63 }
 0x104   :  { %v873_v15 = vpop.permute.xlu2 %872 }
 0x105   :  { %v878_v10 = vsel %vm599_vm9, %v2950_v57, %v873_v15  ;;  %v966_v57 = vld [vmem:[%s3879_s2 + $0xd0] sm:$0xff] }
 0x106   :  { %1885 = vmatmul.msk.f32.vlgmr.msra.gmra.mxu0 %vm884_vm8, %v878_v10  ;;  %985 = vmatpush.msra.mxu1 %v966_v57 }
 0x108   :  { %986 = vmatpush.msra.mxu1 %v965_v17 }
 0x10a   :  { %987 = vmatpush.msra.mxu1 %v964_v40 }
 0x10c   :  { %988 = vmatpush.msra.mxu1 %v963_v27 }
 0x10d   :  { %v875_v54 = vpop.permute.xlu2 %874 }
 0x10e   :  { %v879_v32 = vsel %vm599_vm9, %v867_v58, %v875_v54  ;;  %vm4042_vm9 = vcmask 523264   ;;  %989 = vmatpush.msra.mxu1 %v962_v50  ;;  %v1898_v58 = vld [vmem:[%s3879_s2 + $0xe0] ss:$0 sm:$0xff] }
 0x10f   :  { %1886 = vmatmul.msk.f32.gmra.mxu0 %vm884_vm8, %v879_v32  ;;  %vm4043_vm13 = vmmov %vm4042_vm9 }
 0x110   :  { %990 = vmatpush.msra.mxu1 %v961_v26  ;;  %vm4044_vm7 = vmmov %vm4042_vm9 }
 0x111   :  { %vm4045_vm2 = vmmov %vm4044_vm7 }
 0x112   :  { %991 = vmatpush.msra.mxu1 %v960_v21  ;;  %vm4046_vm15 = vmmov %vm4045_vm2 }
 0x113   :  { %vm4047_vm3 = vmmov %vm4045_vm2 }
 0x114   :  { %vm4056_vm14 = vmmov %vm4045_vm2 }
 0x115   :  { %vm4057_vm1 = vmmov %vm4045_vm2 }
 0x116   :  { %vm4058_vm11 = vmmov %vm4057_vm1 }
 0x117   :  { %vm4059_vm8 = vmmov %vm4057_vm1 }
 0x118   :  { %vm4060_vm12 = vmmov %vm4057_vm1 }
 0x119   :  { %vm4063_vm6 = vmmov %vm4057_vm1 }
 0x183   :  { %v908_v13 = vpop.f32.mrf.mxu0 }
 0x184   :  { %v909_v29 = vadd.f32 %v1897_v24, %v908_v13 }
 0x186   :  { %v914_v60 = vmax.f32 %v909_v29, 0.0 }
 0x188   :  { %v916_v53 = vsel %vm4042_vm9, %v914_v60, 0.0  ;;  %vm4061_vm9 = vmmov %vm4057_vm1 }
 0x18c   :  { %v911_v51 = vpop.f32.mrf.mxu0 }
 0x18d   :  { %v912_v34 = vadd.f32 %v1897_v24, %v911_v51 }
 0x18f   :  { %v915_v7 = vmax.f32 %v912_v34, 0.0 }
 0x191   :  { %v917_v47 = vsel %vm4043_vm13, %v915_v7, 0.0  ;;  %vm4062_vm13 = vmmov %vm4057_vm1 }
 0x192   :  { %v918_v55 = vadd.f32 %v917_v47, %v916_v53 }
 0x194   :  { %v919_v35 = vrot.slane %v918_v55, 4 }
 0x196   :  { %v920_v28 = vadd.f32 %v919_v35, %v918_v55 }
 0x198   :  { %v921_v18 = vrot.slane %v920_v28, 2 }
 0x19a   :  { %v922_v4 = vadd.f32 %v921_v18, %v920_v28 }
 0x19c   :  { %v923_v46 = vrot.slane %v922_v4, 1 }
 0x19e   :  { %v924_v5 = vadd.f32 %v923_v46, %v922_v4 }
 0x1a0   :  { %v932_v56 = vmul.f32 %v2997_v22, %v924_v5 }
 0x1a2   :  { %v934_v16 = vsub.f32 %v915_v7, %v932_v56  ;;  %v933_v43 = vsub.f32 %v914_v60, %v932_v56 }
 0x1a4   :  { %v936_v38 = vmul.f32 %v934_v16, %v934_v16  ;;  %v935_v48 = vmul.f32 %v933_v43, %v933_v43 }
 0x1a6   :  { %v938_v62 = vsel %vm4044_vm7, %v936_v38, 0.0  ;;  %v937_v37 = vsel %vm4045_vm2, %v935_v48, 0.0  ;;  %vm4064_vm7 = vmmov %vm4057_vm1 }
 0x1a7   :  { %v939_v33 = vadd.f32 %v938_v62, %v937_v37  ;;  %vm4065_vm2 = vmmov %vm4057_vm1 }
 0x1a9   :  { %v940_v31 = vrot.slane %v939_v33, 4 }
 0x1ab   :  { %v941_v36 = vadd.f32 %v940_v31, %v939_v33 }
 0x1ad   :  { %v942_v49 = vrot.slane %v941_v36, 2 }
 0x1af   :  { %v943_v39 = vadd.f32 %v942_v49, %v941_v36 }
 0x1b1   :  { %v944_v14 = vrot.slane %v943_v39, 1 }
 0x1b3   :  { %v945_v2 = vadd.f32 %v944_v14, %v943_v39 }
 0x1b5   :  { %v946_v42 = vmul.f32 %v945_v2, %v2997_v22 }
 0x1b7   :  { %v947_v41 = vadd.f32 1e-05, %v946_v42 }
 0x1b9   :  { %1940 = vrsqrt.f32 %v947_v41  ;;  %vm954_vm4 = vweird.f32 %v947_v41 }
 0x1bf   :  { %v1941_v6 = vpop.eup %1940 }
 0x1c0   :  { %v949_v30 = vmul.f32 %v1941_v6, %v947_v41  ;;  %vm955_vm5 = vweird.f32 %v1941_v6 }
 0x1c1   :  { %vm956_vm10 = vmor %vm954_vm4, %vm955_vm5 }
 0x1c2   :  { %v950_v61 = vmul.f32 %v1941_v6, %v949_v30  ;;  %vm4066_vm5 = vmmov %vm4057_vm1 }
 0x1c3   :  { %vm4067_vm4 = vmmov %vm4057_vm1 }
 0x1c4   :  { %v951_v1 = vmul.f32 0.5, %v950_v61 }
 0x1c6   :  { %v952_v11 = vsub.f32 1.5, %v951_v1 }
 0x1c8   :  { %v953_v20 = vmul.f32 %v1941_v6, %v952_v11 }
 0x1ca   :  { %v957_v23 = vsel %vm956_vm10, %v1941_v6, %v953_v20  ;;  %vm4068_vm10 = vmmov %vm4057_vm1 }
 0x1cb   :  { %v958_v59 = vmul.f32 %v957_v23, %v933_v43  ;;  %v959_v63 = vmul.f32 %v957_v23, %v934_v16 }
 0x1cd   :  { %1887 = vmatmul.msk.f32.vlgmr.msra.gmra.mxu1 %vm4046_vm15, %v958_v59  ;;  %vm4069_vm15 = vmmov %vm4057_vm1 }
 0x1d5   :  { %1888 = vmatmul.msk.f32.gmra.mxu1 %vm4047_vm3, %v959_v63  ;;  %vm4070_vm3 = vmmov %vm4057_vm1 }
 0x24a   :  { %v993_v15 = vpop.f32.mrf.mxu1 }
 0x24b   :  { %v3008_v10 = vadd.f32 %v1898_v58, %v993_v15 }
 0x24d   :  { %1047 = vrot.lane.b32.xlu0 %v3008_v10, %s1987_s22  ;;  %v1001_v13 = vrot.slane %v3008_v10, 1  ;;  %v1002_v8 = vrot.slane %v3008_v10, 2  ;;  %v1003_v24 = vrot.slane %v3008_v10, 3  ;;  %v1004_v44 = vrot.slane %v3008_v10, 4 }
 0x24e   :  { %v1005_v57 = vrot.slane %v3008_v10, 5  ;;  %v1006_v17 = vrot.slane %v3008_v10, 6  ;;  %v1007_v29 = vrot.slane %v3008_v10, 7  ;;  %v1015_v50 = vperm.slane %v3008_v10, 0 }
 0x24f   :  { %v3031_v7 = vperm.slane %v1001_v13, 0  ;;  %v3033_v26 = vperm.slane %v1002_v8, 0  ;;  %v3035_v53 = vperm.slane %v1003_v24, 0  ;;  %v3037_v47 = vperm.slane %v1004_v44, 0 }
 0x250   :  { %v3039_v0 = vperm.slane %v1005_v57, 0  ;;  %v3041_v55 = vperm.slane %v1006_v17, 0  ;;  %v3043_v21 = vperm.slane %v1007_v29, 0  ;;  %v3081_v17 = vld [vmem:[%s3877_s1] sm:$0xff] }
 0x251   :  { %4048 = vst [vmem:[#allocation17_spill] sm:$0xff] %v3081_v17 }
 0x252   :  { %v996_v54 = vpop.f32.mrf.mxu1 }
 0x253   :  { %v3012_v32 = vadd.f32 %v1898_v58, %v996_v54 }
 0x255   :  { %1049 = vrot.lane.b32.xlu1 %v3012_v32, %s1987_s22  ;;  %v1008_v25 = vrot.slane %v3012_v32, 1  ;;  %v1009_v40 = vrot.slane %v3012_v32, 2  ;;  %v1010_v51 = vrot.slane %v3012_v32, 3  ;;  %v1011_v27 = vrot.slane %v3012_v32, 4 }
 0x256   :  { %v1012_v60 = vrot.slane %v3012_v32, 5  ;;  %v1013_v34 = vrot.slane %v3012_v32, 6  ;;  %v1014_v52 = vrot.slane %v3012_v32, 7  ;;  %v1023_v35 = vperm.slane %v3012_v32, 0 }
 0x257   :  { %v3046_v45 = vperm.slane %v1008_v25, 0  ;;  %v3048_v28 = vperm.slane %v1009_v40, 0  ;;  %v3050_v18 = vperm.slane %v1010_v51, 0  ;;  %v3052_v4 = vperm.slane %v1011_v27, 0  ;;  %v3087_v25 = vld [vmem:[%s3877_s1 + $0x10] sm:$0xff]  ;;  %v3093_v51 = vld [vmem:[%s3877_s1 + $0x20] sm:$0xff] }
 0x258   :  { %v3054_v46 = vperm.slane %v1012_v60, 0  ;;  %v3056_v5 = vperm.slane %v1013_v34, 0  ;;  %v3058_v56 = vperm.slane %v1014_v52, 0  ;;  %4049 = vst [vmem:[#allocation18_spill] sm:$0xff] %v3087_v25  ;;  %v3099_v60 = vld [vmem:[%s3877_s1 + $0x30] sm:$0xff]  ;;  %v3105_v52 = vld [vmem:[%s3877_s1 + $0x40] sm:$0xff] }
 0x259   :  { %4050 = vst [vmem:[#allocation19_spill] sm:$0xff] %v3093_v51 }
 0x25a   :  { %4051 = vst [vmem:[#allocation20_spill] sm:$0xff] %v3099_v60 }
 0x25b   :  { %4052 = vst [vmem:[#allocation21_spill] sm:$0xff] %v3105_v52 }
 0x2bf   :  { %v1048_v19 = vpop.permute.xlu0 %1047 }
 0x2c0   :  { %v1053_v16 = vadd.f32 %v1048_v19, %v1015_v50  ;;  %v1055_v43 = vadd.f32 %v1048_v19, %v3031_v7  ;;  %v1057_v38 = vadd.f32 %v1048_v19, %v3033_v26  ;;  %v1059_v48 = vadd.f32 %v1048_v19, %v3035_v53 }
 0x2c1   :  { %v1061_v62 = vadd.f32 %v1048_v19, %v3037_v47  ;;  %v1063_v37 = vadd.f32 %v1048_v19, %v3039_v0  ;;  %v1065_v33 = vadd.f32 %v1048_v19, %v3041_v55  ;;  %v1067_v31 = vadd.f32 %v1048_v19, %v3043_v21 }
 0x2c2   :  { %v1069_v36 = vadd.f32 %v1048_v19, %v1023_v35  ;;  %v1071_v49 = vadd.f32 %v1048_v19, %v3046_v45  ;;  %v1073_v39 = vadd.f32 %v1048_v19, %v3048_v28  ;;  %v1075_v14 = vadd.f32 %v1048_v19, %v3050_v18 }
 0x2c3   :  { %v1077_v2 = vadd.f32 %v1048_v19, %v3052_v4  ;;  %v1079_v42 = vadd.f32 %v1048_v19, %v3054_v46  ;;  %v1081_v41 = vadd.f32 %v1048_v19, %v3056_v5  ;;  %v1083_v6 = vadd.f32 %v1048_v19, %v3058_v56 }
 0x2c4   :  { %v1085_v30 = vmax.f32 %v1053_v16, 0.0  ;;  %v1087_v61 = vmax.f32 %v1055_v43, 0.0  ;;  %v1089_v1 = vmax.f32 %v1057_v38, 0.0  ;;  %v1091_v11 = vmax.f32 %v1059_v48, 0.0  ;;  %v3111_v16 = vld [vmem:[%s3877_s1 + $0x50] sm:$0xff]  ;;  %v3117_v38 = vld [vmem:[%s3877_s1 + $0x60] sm:$0xff] }
 0x2c5   :  { %v1093_v20 = vmax.f32 %v1061_v62, 0.0  ;;  %v1095_v23 = vmax.f32 %v1063_v37, 0.0  ;;  %v1097_v59 = vmax.f32 %v1065_v33, 0.0  ;;  %v1099_v63 = vmax.f32 %v1067_v31, 0.0  ;;  %4053 = vst [vmem:[#allocation22_spill] sm:$0xff] %v3111_v16  ;;  %v3123_v62 = vld [vmem:[%s3877_s1 + $0x70] sm:$0xff] }
 0x2c6   :  { %v1101_v58 = vmax.f32 %v1069_v36, 0.0  ;;  %v1103_v15 = vmax.f32 %v1071_v49, 0.0  ;;  %v1105_v54 = vmax.f32 %v1073_v39, 0.0  ;;  %v1107_v13 = vmax.f32 %v1075_v14, 0.0  ;;  %4054 = vst [vmem:[#allocation23_spill] sm:$0xff] %v3117_v38  ;;  %v1952_v33 = vld [vmem:[%s3877_s1 + $0x80] sm:$0xff] }
 0x2c7   :  { %v1109_v8 = vmax.f32 %v1077_v2, 0.0  ;;  %v1111_v24 = vmax.f32 %v1079_v42, 0.0  ;;  %v1113_v44 = vmax.f32 %v1081_v41, 0.0  ;;  %v1115_v57 = vmax.f32 %v1083_v6, 0.0  ;;  %4055 = vst [vmem:[#allocation24_spill] sm:$0xff] %v3123_v62  ;;  %v1953_v36 = vld [vmem:[%s3877_s1 + $0x90] sm:$0xff] }
 0x2c8   :  { %v1117_v29 = vmul.f32 %v3081_v17, %v1085_v30  ;;  %v1119_v40 = vmul.f32 %v3087_v25, %v1087_v61  ;;  %v1121_v27 = vmul.f32 %v3093_v51, %v1089_v1  ;;  %v1123_v34 = vmul.f32 %v3099_v60, %v1091_v11  ;;  %v1954_v39 = vld [vmem:[%s3877_s1 + $0xa0] sm:$0xff]  ;;  %v1955_v2 = vld [vmem:[%s3877_s1 + $0xb0] sm:$0xff] }
 0x2c9   :  { %v1125_v19 = vmul.f32 %v3105_v52, %v1093_v20  ;;  %v1127_v43 = vmul.f32 %v3111_v16, %v1095_v23  ;;  %v1129_v48 = vmul.f32 %v3117_v38, %v1097_v59  ;;  %v1131_v37 = vmul.f32 %v3123_v62, %v1099_v63  ;;  %v1956_v41 = vld [vmem:[%s3877_s1 + $0xc0] sm:$0xff]  ;;  %v1957_v30 = vld [vmem:[%s3877_s1 + $0xd0] sm:$0xff] }
 0x2ca   :  { %v1133_v31 = vmul.f32 %v1952_v33, %v1101_v58  ;;  %v1135_v49 = vmul.f32 %v1953_v36, %v1103_v15  ;;  %v1137_v14 = vmul.f32 %v1954_v39, %v1105_v54  ;;  %v1139_v42 = vmul.f32 %v1955_v2, %v1107_v13  ;;  %v1958_v1 = vld [vmem:[%s3877_s1 + $0xe0] sm:$0xff]  ;;  %v1959_v20 = vld [vmem:[%s3877_s1 + $0xf0] sm:$0xff]  ;;  %v1050_v54 = vpop.permute.xlu1 %1049 }
 0x2cb   :  { %v1141_v6 = vmul.f32 %v1956_v41, %v1109_v8  ;;  %v1143_v61 = vmul.f32 %v1957_v30, %v1111_v24  ;;  %v1145_v11 = vmul.f32 %v1958_v1, %v1113_v44  ;;  %v1147_v23 = vmul.f32 %v1959_v20, %v1115_v57 }
 0x2cc   :  { %v3151_v59 = vsel %vm4056_vm14, %v1117_v29, 0.0  ;;  %v3154_v63 = vsel %vm4057_vm1, %v1119_v40, 0.0  ;;  %v3157_v58 = vsel %vm4058_vm11, %v1121_v27, 0.0  ;;  %v3160_v15 = vsel %vm4059_vm8, %v1123_v34, 0.0  ;;  %vm4071_vm14 = vmmov %vm4057_vm1 }
 0x2cd   :  { %v3163_v13 = vsel %vm4060_vm12, %v1125_v19, 0.0  ;;  %v3166_v8 = vsel %vm4061_vm9, %v1127_v43, 0.0  ;;  %v3169_v24 = vsel %vm4062_vm13, %v1129_v48, 0.0  ;;  %v3172_v44 = vsel %vm4063_vm6, %v1131_v37, 0.0  ;;  %vm4080_vm11 = vmmov %vm4057_vm1 }
 0x2ce   :  { %v3175_v57 = vsel %vm4064_vm7, %v1133_v31, 0.0  ;;  %v3178_v29 = vsel %vm4065_vm2, %v1135_v49, 0.0  ;;  %v3181_v40 = vsel %vm4066_vm5, %v1137_v14, 0.0  ;;  %v3184_v27 = vsel %vm4067_vm4, %v1139_v42, 0.0  ;;  %vm4081_vm8 = vmmov %vm4057_vm1 }
 0x2cf   :  { %v3187_v34 = vsel %vm4068_vm10, %v1141_v6, 0.0  ;;  %v3190_v19 = vsel %vm4069_vm15, %v1143_v61, 0.0  ;;  %v3193_v43 = vsel %vm4070_vm3, %v1145_v11, 0.0  ;;  %v3196_v48 = vsel %vm4071_vm14, %v1147_v23, 0.0  ;;  %vm4082_vm12 = vmmov %vm4057_vm1 }
 0x2d0   :  { %v1293_v37 = vadd.f32 %v3154_v63, %v3151_v59  ;;  %v1054_v33 = vadd.f32 %v1050_v54, %v1015_v50  ;;  %v1056_v31 = vadd.f32 %v1050_v54, %v3031_v7  ;;  %v1058_v36 = vadd.f32 %v1050_v54, %v3033_v26  ;;  %vm4083_vm9 = vmmov %vm4057_vm1 }
 0x2d1   :  { %v1060_v49 = vadd.f32 %v1050_v54, %v3035_v53  ;;  %v1062_v39 = vadd.f32 %v1050_v54, %v3037_v47  ;;  %v1064_v14 = vadd.f32 %v1050_v54, %v3039_v0  ;;  %v1066_v2 = vadd.f32 %v1050_v54, %v3041_v55  ;;  %vm4084_vm13 = vmmov %vm4057_vm1 }
 0x2d2   :  { %v1294_v42 = vadd.f32 %v1293_v37, %v3157_v58  ;;  %v1068_v41 = vadd.f32 %v1050_v54, %v3043_v21  ;;  %v1070_v10 = vadd.f32 %v1050_v54, %v1023_v35  ;;  %v1072_v50 = vadd.f32 %v1050_v54, %v3046_v45  ;;  %vm4085_vm6 = vmmov %vm4057_vm1 }
 0x2d3   :  { %v1074_v7 = vadd.f32 %v1050_v54, %v3048_v28  ;;  %v1076_v26 = vadd.f32 %v1050_v54, %v3050_v18  ;;  %v1078_v53 = vadd.f32 %v1050_v54, %v3052_v4  ;;  %v1080_v47 = vadd.f32 %v1050_v54, %v3054_v46  ;;  %vm4086_vm7 = vmmov %vm4057_vm1 }
 0x2d4   :  { %v1295_v0 = vadd.f32 %v1294_v42, %v3160_v15  ;;  %v1082_v55 = vadd.f32 %v1050_v54, %v3056_v5  ;;  %v1084_v6 = vadd.f32 %v1050_v54, %v3058_v56  ;;  %v1086_v21 = vmax.f32 %v1054_v33, 0.0  ;;  %v3225_v54 = vld [vmem:[%s3877_s1 + $0x8] sm:$0xff]  ;;  %vm4087_vm2 = vmmov %vm4057_vm1 }
 0x2d5   :  { %v1088_v30 = vmax.f32 %v1056_v31, 0.0  ;;  %v1090_v32 = vmax.f32 %v1058_v36, 0.0  ;;  %v1092_v35 = vmax.f32 %v1060_v49, 0.0  ;;  %v1094_v61 = vmax.f32 %v1062_v39, 0.0  ;;  %v3231_v31 = vld [vmem:[%s3877_s1 + $0x18] sm:$0xff]  ;;  %v3237_v49 = vld [vmem:[%s3877_s1 + $0x28] sm:$0xff]  ;;  %vm4088_vm5 = vmmov %vm4057_vm1 }
 0x2d6   :  { %v1296_v45 = vadd.f32 %v1295_v0, %v3163_v13  ;;  %v1096_v28 = vmax.f32 %v1064_v14, 0.0  ;;  %v1098_v1 = vmax.f32 %v1066_v2, 0.0  ;;  %v1100_v18 = vmax.f32 %v1068_v41, 0.0  ;;  %v3244_v2 = vld [vmem:[%s3877_s1 + $0x38] sm:$0xff]  ;;  %vm4089_vm4 = vmmov %vm4057_vm1 }
 0x2d7   :  { %v1102_v11 = vmax.f32 %v1070_v10, 0.0  ;;  %v1104_v4 = vmax.f32 %v1072_v50, 0.0  ;;  %v1106_v20 = vmax.f32 %v1074_v7, 0.0  ;;  %v1108_v46 = vmax.f32 %v1076_v26, 0.0  ;;  %v3250_v10 = vld [vmem:[%s3877_s1 + $0x48] sm:$0xff]  ;;  %v3256_v7 = vld [vmem:[%s3877_s1 + $0x58] sm:$0xff]  ;;  %vm4090_vm10 = vmmov %vm4057_vm1 }
 0x2d8   :  { %v1297_v23 = vadd.f32 %v1296_v45, %v3166_v8  ;;  %v1110_v37 = vmax.f32 %v1078_v53, 0.0  ;;  %v1112_v5 = vmax.f32 %v1080_v47, 0.0  ;;  %v1114_v42 = vmax.f32 %v1082_v55, 0.0  ;;  %v3262_v53 = vld [vmem:[%s3877_s1 + $0x68] sm:$0xff]  ;;  %v3268_v0 = vld [vmem:[%s3877_s1 + $0x78] sm:$0xff]  ;;  %vm4091_vm15 = vmmov %vm4057_vm1 }
 0x2d9   :  { %v1116_v56 = vmax.f32 %v1084_v6, 0.0  ;;  %v1118_v33 = vmul.f32 %v3225_v54, %v1086_v21  ;;  %v1120_v36 = vmul.f32 %v3231_v31, %v1088_v30  ;;  %v1122_v39 = vmul.f32 %v3237_v49, %v1090_v32  ;;  %v3274_v6 = vld [vmem:[%s3877_s1 + $0x88] sm:$0xff]  ;;  %v3280_v30 = vld [vmem:[%s3877_s1 + $0x98] sm:$0xff]  ;;  %vm4092_vm3 = vmmov %vm4057_vm1 }
 0x2da   :  { %v1298_v14 = vadd.f32 %v1297_v23, %v3169_v24  ;;  %v1124_v41 = vmul.f32 %v3244_v2, %v1092_v35  ;;  %v1126_v50 = vmul.f32 %v3250_v10, %v1094_v61  ;;  %v1128_v26 = vmul.f32 %v3256_v7, %v1096_v28  ;;  %4072 = vst [vmem:[#allocation25_spill] sm:$0xff] %v3274_v6  ;;  %v3287_v61 = vld [vmem:[%s3877_s1 + $0xa8] sm:$0xff]  ;;  %v3293_v28 = vld [vmem:[%s3877_s1 + $0xb8] sm:$0xff]  ;;  %vm4093_vm14 = vmmov %vm4057_vm1 }
 0x2db   :  { %v1130_v47 = vmul.f32 %v3262_v53, %v1098_v1  ;;  %v1132_v55 = vmul.f32 %v3268_v0, %v1100_v18  ;;  %v1134_v21 = vmul.f32 %v3274_v6, %v1102_v11  ;;  %4073 = vst [vmem:[#allocation26_spill] sm:$0xff] %v3280_v30  ;;  %v1136_v32 = vmul.f32 %v3280_v30, %v1104_v4  ;;  %v3299_v18 = vld [vmem:[%s3877_s1 + $0xc8] sm:$0xff]  ;;  %v3305_v4 = vld [vmem:[%s3877_s1 + $0xd8] sm:$0xff] }
 0x2dc   :  { %v1299_v35 = vadd.f32 %v1298_v14, %v3172_v44  ;;  %4074 = vst [vmem:[#allocation27_spill] sm:$0xff] %v3287_v61  ;;  %v1138_v45 = vmul.f32 %v3287_v61, %v1106_v20  ;;  %v1140_v1 = vmul.f32 %v3293_v28, %v1108_v46  ;;  %v1142_v11 = vmul.f32 %v3299_v18, %v1110_v37  ;;  %v3311_v23 = vld [vmem:[%s3877_s1 + $0xe8] sm:$0xff]  ;;  %v3317_v14 = vld [vmem:[%s3877_s1 + $0xf8] sm:$0xff] }
 0x2dd   :  { %4075 = vst [vmem:[#allocation28_spill] sm:$0xff] %v3293_v28  ;;  %v1144_v20 = vmul.f32 %v3305_v4, %v1112_v5  ;;  %v1146_v46 = vmul.f32 %v3311_v23, %v1114_v42  ;;  %v1148_v37 = vmul.f32 %v3317_v14, %v1116_v56  ;;  %v1150_v62 = vsel %vm4057_vm1, %v1118_v33, 0.0 }
 0x2de   :  { %4076 = vst [vmem:[#allocation29_spill] sm:$0xff] %v3299_v18  ;;  %v1300_v38 = vadd.f32 %v1299_v35, %v3175_v57  ;;  %v1159_v5 = vsel %vm4080_vm11, %v1120_v36, 0.0  ;;  %v1168_v16 = vsel %vm4081_vm8, %v1122_v39, 0.0  ;;  %v3325_v52 = vsel %vm4082_vm12, %v1124_v41, 0.0 }
 0x2df   :  { %4077 = vst [vmem:[#allocation30_spill] sm:$0xff] %v3305_v4  ;;  %v3328_v42 = vsel %vm4083_vm9, %v1126_v50, 0.0  ;;  %v3331_v60 = vsel %vm4084_vm13, %v1128_v26, 0.0  ;;  %v3334_v51 = vsel %vm4085_vm6, %v1130_v47, 0.0  ;;  %v3337_v56 = vsel %vm4086_vm7, %v1132_v55, 0.0 }
 0x2e0   :  { %4078 = vst [vmem:[#allocation31_spill] sm:$0xff] %v3311_v23  ;;  %v1301_v33 = vadd.f32 %v1300_v38, %v3178_v29  ;;  %v3341_v36 = vsel %vm4087_vm2, %v1134_v21, 0.0  ;;  %v3344_v39 = vsel %vm4088_vm5, %v1136_v32, 0.0  ;;  %v3347_v41 = vsel %vm4089_vm4, %v1138_v45, 0.0 }
 0x2e1   :  { %4079 = vst [vmem:[#allocation32_spill] sm:$0xff] %v3317_v14  ;;  %v1223_v50 = vadd.f32 %v3341_v36, %v3175_v57  ;;  %v1232_v26 = vadd.f32 %v3344_v39, %v3178_v29  ;;  %v1241_v47 = vadd.f32 %v3347_v41, %v3181_v40  ;;  %v3356_v38 = vsel %vm4090_vm10, %v1140_v1, 0.0 }
 0x2e2   :  { %v1302_v55 = vadd.f32 %v1301_v33, %v3181_v40  ;;  %v1250_v21 = vadd.f32 %v3356_v38, %v3184_v27  ;;  %v3362_v32 = vsel %vm4091_vm15, %v1142_v11, 0.0  ;;  %v3365_v35 = vsel %vm4092_vm3, %v1144_v20, 0.0 }
 0x2e3   :  { %v1224_v57 = vrot.slane %v1223_v50, 4  ;;  %v1233_v45 = vrot.slane %v1232_v26, 4  ;;  %v1242_v29 = vrot.slane %v1241_v47, 4  ;;  %v1259_v25 = vadd.f32 %v3362_v32, %v3187_v34 }
 0x2e4   :  { %v1303_v1 = vadd.f32 %v1302_v55, %v3184_v27  ;;  %v1251_v17 = vrot.slane %v1250_v21, 4  ;;  %v1268_v40 = vadd.f32 %v3365_v35, %v3190_v19  ;;  %v3373_v33 = vsel %vm4093_vm14, %v1146_v46, 0.0 }
 0x2e5   :  { %v3375_v11 = vadd.f32 %v1224_v57, %v1223_v50  ;;  %v1234_v14 = vadd.f32 %v1233_v45, %v1232_v26  ;;  %v1243_v20 = vadd.f32 %v1242_v29, %v1241_v47  ;;  %v1260_v23 = vrot.slane %v1259_v25, 4 }
 0x2e6   :  { %v1304_v4 = vadd.f32 %v1303_v1, %v3187_v34  ;;  %v1252_v18 = vadd.f32 %v1251_v17, %v1250_v21  ;;  %v1269_v28 = vrot.slane %v1268_v40, 4  ;;  %v1277_v61 = vadd.f32 %v3373_v33, %v3193_v43 }
 0x2e7   :  { %v1226_v27 = vrot.slane %v3375_v11, 2  ;;  %v1235_v55 = vrot.slane %v1234_v14, 2  ;;  %v1244_v30 = vrot.slane %v1243_v20, 2  ;;  %v3381_v6 = vadd.f32 %v1260_v23, %v1259_v25  ;;  %v1397_v23 = vld [vmem:[%s3879_s2 + $0x88] sm:$0xff] }
 0x2e8   :  { %v1305_v46 = vadd.f32 %v1304_v4, %v3190_v19  ;;  %v1253_v50 = vrot.slane %v1252_v18, 2  ;;  %v3384_v57 = vadd.f32 %v1269_v28, %v1268_v40  ;;  %v1278_v26 = vrot.slane %v1277_v61, 4 }
 0x2e9   :  { %v3386_v47 = vadd.f32 %v1235_v55, %v1234_v14  ;;  %v3388_v34 = vadd.f32 %v1244_v30, %v1243_v20  ;;  %v1262_v17 = vrot.slane %v3381_v6, 2  ;;  %v3392_v21 = vsel %vm4057_vm1, %v1148_v37, 0.0  ;;  %v1398_v30 = vld [vmem:[%s3879_s2 + $0x90] sm:$0xff]  ;;  %v1396_v55 = vld [vmem:[%s3879_s2 + $0x80] sm:$0xff] }
 0x2ea   :  { %v1306_v45 = vadd.f32 %v1305_v46, %v3193_v43  ;;  %v3395_v29 = vadd.f32 %v1253_v50, %v1252_v18  ;;  %v1271_v25 = vrot.slane %v3384_v57, 2  ;;  %v3398_v19 = vadd.f32 %v1278_v26, %v1277_v61  ;;  %1401 = vmatpush.msra.mxu2 %v1398_v30 }
 0x2eb   :  { %v1286_v28 = vadd.f32 %v3392_v21, %v3196_v48  ;;  %v1308_v4 = vadd.f32 %v1159_v5, %v1150_v62  ;;  %v1151_v43 = vadd.f32 %v1150_v62, %v3151_v59  ;;  %v1160_v18 = vadd.f32 %v1159_v5, %v3154_v63 }
 0x2ec   :  { %v1307_v14 = vadd.f32 %v1306_v45, %v3196_v48  ;;  %v1280_v61 = vrot.slane %v3398_v19, 2  ;;  %v1169_v37 = vadd.f32 %v1168_v16, %v3157_v58  ;;  %v1178_v1 = vadd.f32 %v3325_v52, %v3160_v15  ;;  %1402 = vmatpush.msra.mxu2 %v1397_v23 }
 0x2ed   :  { %v1287_v40 = vrot.slane %v1286_v28, 4  ;;  %v1309_v20 = vadd.f32 %v1308_v4, %v1168_v16  ;;  %v1152_v46 = vrot.slane %v1151_v43, 4  ;;  %v1161_v62 = vrot.slane %v1160_v18, 4  ;;  %v1395_v16 = vld [vmem:[%s3879_s2 + $0x78] sm:$0xff] }
 0x2ee   :  { %v1339_v59 = vmul.f32 %v1307_v14, %v2256_v12  ;;  %v1170_v63 = vrot.slane %v1169_v37, 4  ;;  %v1179_v48 = vrot.slane %v1178_v1, 4  ;;  %v1187_v5 = vadd.f32 %v3328_v42, %v3163_v13  ;;  %1403 = vmatpush.msra.mxu2 %v1396_v55 }
 0x2ef   :  { %v3421_v58 = vadd.f32 %v1287_v40, %v1286_v28  ;;  %v1310_v15 = vadd.f32 %v1309_v20, %v3325_v52  ;;  %v1153_v50 = vadd.f32 %v1152_v46, %v1151_v43  ;;  %v1162_v26 = vadd.f32 %v1161_v62, %v1160_v18  ;;  %v1394_v52 = vld [vmem:[%s3879_s2 + $0x70] sm:$0xff] }
 0x2f0   :  { %1375 = vrot.lane.b32.xlu2 %v1339_v59, %s1987_s22  ;;  %v1171_v12 = vadd.f32 %v1170_v63, %v1169_v37  ;;  %v1180_v45 = vadd.f32 %v1179_v48, %v1178_v1  ;;  %v1188_v4 = vrot.slane %v1187_v5, 4  ;;  %v1196_v30 = vadd.f32 %v3331_v60, %v3166_v8  ;;  %1404 = vmatpush.msra.mxu2 %v1395_v16  ;;  %v1393_v8 = vld [vmem:[%s3879_s2 + $0x68] sm:$0xff] }
 0x2f1   :  { %v1289_v13 = vrot.slane %v3421_v58, 2  ;;  %v1311_v28 = vadd.f32 %v1310_v15, %v3328_v42  ;;  %v1154_v23 = vrot.slane %v1153_v50, 2  ;;  %v1163_v43 = vrot.slane %v1162_v26, 2 }
 0x2f2   :  { %v1172_v18 = vrot.slane %v1171_v12, 2  ;;  %v1181_v14 = vrot.slane %v1180_v45, 2  ;;  %v1189_v40 = vadd.f32 %v1188_v4, %v1187_v5  ;;  %v1197_v37 = vrot.slane %v1196_v30, 4  ;;  %1405 = vmatpush.msra.mxu2 %v1394_v52 }
 0x2f3   :  { %v1312_v1 = vadd.f32 %v1311_v28, %v3331_v60  ;;  %v1155_v20 = vadd.f32 %v1154_v23, %v1153_v50  ;;  %v1164_v55 = vadd.f32 %v1163_v43, %v1162_v26  ;;  %v1205_v42 = vadd.f32 %v3334_v51, %v3169_v24  ;;  %v1392_v60 = vld [vmem:[%s3879_s2 + $0x60] sm:$0xff] }
 0x2f4   :  { %v1173_v46 = vadd.f32 %v1172_v18, %v1171_v12  ;;  %v1182_v62 = vadd.f32 %v1181_v14, %v1180_v45  ;;  %v1190_v59 = vrot.slane %v1189_v40, 2  ;;  %v1198_v63 = vadd.f32 %v1197_v37, %v1196_v30  ;;  %1406 = vmatpush.msra.mxu2 %v1393_v8  ;;  %v1391_v12 = vld [vmem:[%s3879_s2 + $0x58] sm:$0xff] }
 0x2f5   :  { %v1313_v48 = vadd.f32 %v1312_v1, %v3334_v51  ;;  %v1156_v5 = vrot.slane %v1155_v20, 1  ;;  %v1165_v15 = vrot.slane %v1164_v55, 1  ;;  %v1206_v16 = vrot.slane %v1205_v42, 4 }
 0x2f6   :  { %v1174_v50 = vrot.slane %v1173_v46, 1  ;;  %v1183_v26 = vrot.slane %v1182_v62, 1  ;;  %v1191_v4 = vadd.f32 %v1190_v59, %v1189_v40  ;;  %v1199_v28 = vrot.slane %v1198_v63, 2  ;;  %1407 = vmatpush.msra.mxu2 %v1392_v60  ;;  %v1390_v40 = vld [vmem:[%s3879_s2 + $0x50] sm:$0xff] }
 0x2f7   :  { %v1314_v24 = vadd.f32 %v1313_v48, %v3337_v56  ;;  %v1157_v45 = vadd.f32 %v1156_v5, %v1155_v20  ;;  %v1166_v51 = vadd.f32 %v1165_v15, %v1164_v55  ;;  %v1207_v30 = vadd.f32 %v1206_v16, %v1205_v42  ;;  %v4094_v42 = vld [vmem:[#allocation2_spill] sm:$0xff]  ;;  %v4096_v5 = vld [vmem:[#allocation4_spill] sm:$0xff] }
 0x2f8   :  { %v1175_v52 = vadd.f32 %v1174_v50, %v1173_v46  ;;  %v1184_v23 = vadd.f32 %v1183_v26, %v1182_v62  ;;  %v1192_v43 = vrot.slane %v1191_v4, 1  ;;  %v1200_v18 = vadd.f32 %v1199_v28, %v1198_v63  ;;  %1408 = vmatpush.msra.mxu2 %v1391_v12  ;;  %v4095_v62 = vld [vmem:[#allocation3_spill] sm:$0xff] }
 0x2f9   :  { %v1315_v14 = vadd.f32 %v1314_v24, %v3341_v36  ;;  %v1208_v37 = vrot.slane %v1207_v30, 2  ;;  %v1214_v1 = vadd.f32 %v3337_v56, %v3172_v44  ;;  %v1323_v8 = vmul.f32 %v1157_v45, %v2364_v3  ;;  %v1389_v36 = vld [vmem:[%s3879_s2 + $0x48] sm:$0xff]  ;;  %v4097_v56 = vld [vmem:[#allocation5_spill] sm:$0xff]  ;;  %v4100_v45 = vld [vmem:[#allocation6_spill] sm:$0xff] }
 0x2fa   :  { %v1193_v20 = vadd.f32 %v1192_v43, %v1191_v4  ;;  %v1201_v55 = vrot.slane %v1200_v18, 1  ;;  %v1324_v46 = vmul.f32 %v1166_v51, %v4094_v42  ;;  %v1325_v59 = vmul.f32 %v1175_v52, %v4095_v62  ;;  %1409 = vmatpush.msra.mxu2 %v1390_v40  ;;  %v1388_v4 = vld [vmem:[%s3879_s2 + $0x40] sm:$0xff] }
 0x2fb   :  { %v1316_v63 = vadd.f32 %v1315_v14, %v3344_v39  ;;  %v1209_v48 = vadd.f32 %v1208_v37, %v1207_v30  ;;  %v1215_v60 = vrot.slane %v1214_v1, 4  ;;  %v1326_v15 = vmul.f32 %v1184_v23, %v4096_v5 }
 0x2fc   :  { %v1202_v44 = vadd.f32 %v1201_v55, %v1200_v18  ;;  %v1327_v16 = vmul.f32 %v1193_v20, %v4097_v56  ;;  %vm4098_vm11 = vcmask 1041409   ;;  %v1227_v26 = vadd.f32 %v1226_v27, %v3375_v11  ;;  %1410 = vmatpush.msra.mxu2 %v1389_v36  ;;  %v4104_v55 = vld [vmem:[#allocation7_spill] sm:$0xff] }
 0x2fd   :  { %v1357_v50 = vsel %vm4098_vm11, %v1324_v46, %v1323_v8  ;;  %v1317_v39 = vadd.f32 %v1316_v63, %v3347_v41  ;;  %v1210_v28 = vrot.slane %v1209_v48, 1  ;;  %v1216_v24 = vadd.f32 %v1215_v60, %v1214_v1  ;;  %v1387_v41 = vld [vmem:[%s3879_s2 + $0x38] sm:$0xff]  ;;  %v1385_v60 = vld [vmem:[%s3879_s2 + $0x28] sm:$0xff]  ;;  %vm4112_vm2 = vmmov %vm4098_vm11 }
 0x2fe   :  { %vm4099_vm8 = vcmask 1042434   ;;  %v1328_v51 = vmul.f32 %v1202_v44, %v4100_v45  ;;  %vm4101_vm12 = vcmask 1043459   ;;  %v1228_v52 = vrot.slane %v1227_v26, 1  ;;  %1411 = vmatpush.msra.mxu2 %v1388_v4  ;;  %vm4123_vm11 = vmmov %vm4057_vm1 }
 0x2ff   :  { %v1358_v12 = vsel %vm4099_vm8, %v1325_v59, %v1357_v50  ;;  %v1237_v23 = vrot.slane %v3386_v47, 1  ;;  %v1318_v11 = vadd.f32 %v1317_v39, %v3356_v38  ;;  %v1211_v27 = vadd.f32 %v1210_v28, %v1209_v48  ;;  %v1386_v38 = vld [vmem:[%s3879_s2 + $0x30] sm:$0xff]  ;;  %vm4114_vm5 = vmmov %vm4099_vm8 }
 0x300   :  { %v1359_v30 = vsel %vm4101_vm12, %v1326_v15, %v1358_v12  ;;  %v1217_v43 = vrot.slane %v1216_v24, 2  ;;  %vm4102_vm9 = vcmask 1044484   ;;  %vm4103_vm13 = vcmask 1045509   ;;  %1412 = vmatpush.msra.mxu2 %v1387_v41  ;;  %vm4116_vm4 = vmmov %vm4101_vm12 }
 0x301   :  { %v1360_v18 = vsel %vm4102_vm9, %v1327_v16, %v1359_v30  ;;  %v1229_v40 = vadd.f32 %v1228_v52, %v1227_v26  ;;  %v1238_v37 = vadd.f32 %v1237_v23, %v3386_v47  ;;  %v1246_v1 = vrot.slane %v3388_v34, 1  ;;  %v4107_v26 = vld [vmem:[#allocation10_spill] sm:$0xff]  ;;  %v4110_v30 = vld [vmem:[#allocation12_spill] sm:$0xff]  ;;  %vm4118_vm10 = vmmov %vm4102_vm9 }
 0x302   :  { %v1361_v14 = vsel %vm4103_vm13, %v1328_v51, %v1360_v18  ;;  %v1319_v8 = vadd.f32 %v1318_v11, %v3362_v32  ;;  %v1218_v20 = vadd.f32 %v1217_v43, %v1216_v24  ;;  %v1329_v46 = vmul.f32 %v1211_v27, %v4104_v55  ;;  %1413 = vmatpush.msra.mxu2 %v1386_v38  ;;  %v4108_v24 = vld [vmem:[#allocation8_spill] sm:$0xff]  ;;  %v4113_v43 = vld [vmem:[#allocation13_spill] sm:$0xff]  ;;  %vm4120_vm15 = vmmov %vm4103_vm13 }
 0x303   :  { %v1255_v59 = vrot.slane %v3395_v29, 1  ;;  %v1247_v63 = vadd.f32 %v1246_v1, %v3388_v34  ;;  %v1263_v47 = vadd.f32 %v1262_v17, %v3381_v6  ;;  %v1272_v32 = vadd.f32 %v1271_v25, %v3384_v57  ;;  %v4117_v1 = vld [vmem:[#allocation15_spill] sm:$0xff]  ;;  %vm4124_vm8 = vmmov %vm4057_vm1 }
 0x304   :  { %v1281_v36 = vadd.f32 %v1280_v61, %v3398_v19  ;;  %v1320_v48 = vadd.f32 %v1319_v8, %v3365_v35  ;;  %v1219_v15 = vrot.slane %v1218_v20, 1  ;;  %vm4105_vm6 = vcmask 1046534   ;;  %v1384_v35 = vld [vmem:[%s3879_s2 + $0x20] sm:$0xff]  ;;  %v4106_v61 = vld [vmem:[#allocation9_spill] sm:$0xff]  ;;  %1414 = vmatpush.msra.mxu2 %v1385_v60  ;;  %vm4125_vm12 = vmmov %vm4057_vm1 }
 0x305   :  { %v1362_v34 = vsel %vm4105_vm6, %v1329_v46, %v1361_v14  ;;  %v1256_v44 = vadd.f32 %v1255_v59, %v3395_v29  ;;  %v1264_v6 = vrot.slane %v1263_v47, 1  ;;  %v1273_v17 = vrot.slane %v1272_v32, 1  ;;  %v4115_v14 = vld [vmem:[#allocation14_spill] sm:$0xff]  ;;  %vm4121_vm3 = vmmov %vm4105_vm6 }
 0x306   :  { %v1282_v16 = vrot.slane %v1281_v36, 1  ;;  %v1290_v57 = vadd.f32 %v1289_v13, %v3421_v58  ;;  %v1321_v25 = vadd.f32 %v1320_v48, %v3373_v33  ;;  %v1220_v19 = vadd.f32 %v1219_v15, %v1218_v20  ;;  %v4109_v58 = vld [vmem:[#allocation11_spill] sm:$0xff]  ;;  %1415 = vmatpush.msra.mxu2 %v1384_v35  ;;  %v1466_v35 = vld [vmem:[%s3879_s2 + $0x100] sm:$0xff]  ;;  %vm4126_vm9 = vmmov %vm4057_vm1 }
 0x307   :  { %v1331_v50 = vmul.f32 %v1229_v40, %v4106_v61  ;;  %v1332_v39 = vmul.f32 %v1238_v37, %v4107_v26  ;;  %v1265_v29 = vadd.f32 %v1264_v6, %v1263_v47  ;;  %v1274_v51 = vadd.f32 %v1273_v17, %v1272_v32  ;;  %v1383_v47 = vld [vmem:[%s3879_s2 + $0x18] sm:$0xff]  ;;  %v1468_v17 = vld [vmem:[%s3879_s2 + $0x110] sm:$0xff]  ;;  %vm4127_vm13 = vmmov %vm4057_vm1 }
 0x308   :  { %v1291_v4 = vrot.slane %v1290_v57, 1  ;;  %v1322_v28 = vadd.f32 %v1321_v25, %v3392_v21  ;;  %v1330_v12 = vmul.f32 %v1220_v19, %v4108_v24  ;;  %v1333_v13 = vmul.f32 %v1247_v63, %v4109_v58  ;;  %1416 = vmatpush.msra.mxu2 %v1383_v47  ;;  %v1469_v6 = vld [vmem:[%s3879_s2 + $0x118] sm:$0xff] }
 0x309   :  { %v1283_v33 = vadd.f32 %v1282_v16, %v1281_v36  ;;  %v1334_v52 = vmul.f32 %v1256_v44, %v4110_v30  ;;  %vm4111_vm7 = vcmask 1047559   ;;  %v1364_v27 = vsel %vm4112_vm2, %v1332_v39, %v1331_v50  ;;  %v1470_v44 = vld [vmem:[%s3879_s2 + $0x120] sm:$0xff]  ;;  %v1465_v39 = vld [vmem:[%s3879_s2 + $0xf8] sm:$0xff] }
 0x30a   :  { %v1340_v23 = vmul.f32 %v1322_v28, %v2314_v9  ;;  %v1363_v11 = vsel %vm4111_vm7, %v1330_v12, %v1362_v34  ;;  %v1292_v41 = vadd.f32 %v1291_v4, %v1290_v57  ;;  %v1335_v18 = vmul.f32 %v1265_v29, %v4113_v43  ;;  %v4119_v9 = vld [vmem:[#allocation16_spill] sm:$0xff]  ;;  %vm4122_vm14 = vmmov %vm4111_vm7  ;;  %v1899_v34 = vld [vmem:[%s3879_s2 + $0x98] ss:$0 sm:$0xff]  ;;  %1487 = vmatpush.msra.mxu3 %v1470_v44 }
 0x30b   :  { %v1365_v21 = vsel %vm4114_vm5, %v1333_v13, %v1364_v27  ;;  %v1336_v40 = vmul.f32 %v1274_v51, %v4115_v14  ;;  %v1337_v8 = vmul.f32 %v1283_v33, %v4117_v1  ;;  %v1467_v57 = vld [vmem:[%s3879_s2 + $0x108] sm:$0xff]  ;;  %v1464_v4 = vld [vmem:[%s3879_s2 + $0xf0] sm:$0xff]  ;;  %vm4128_vm5 = vmmov %vm4057_vm1 }
 0x30c   :  { %1377 = vrot.lane.b32.xlu0 %v1340_v23, %s1987_s22  ;;  %v1366_v37 = vsel %vm4116_vm4, %v1334_v52, %v1365_v21  ;;  %v1338_v20 = vmul.f32 %v1292_v41, %v4119_v9  ;;  %1488 = vmatpush.msra.mxu3 %v1469_v6  ;;  %v1463_v13 = vld [vmem:[%s3879_s2 + $0xe8] sm:$0xff]  ;;  %vm4129_vm4 = vmmov %vm4057_vm1  ;;  %v4141_v1 = vld [vmem:[#allocation29_spill] sm:$0xff] }
 0x30d   :  { %v1367_v38 = vsel %vm4118_vm10, %v1335_v18, %v1366_v37  ;;  %vm4130_vm10 = vmmov %vm4057_vm1  ;;  %v4142_v43 = vld [vmem:[#allocation30_spill] sm:$0xff] }
 0x30e   :  { %v1368_v46 = vsel %vm4120_vm15, %v1336_v40, %v1367_v38  ;;  %1489 = vmatpush.msra.mxu3 %v1468_v17  ;;  %vm4131_vm15 = vmmov %vm4057_vm1  ;;  %v4159_v30 = vld [vmem:[#allocation22_spill] sm:$0xff] }
 0x30f   :  { %v1369_v59 = vsel %vm4121_vm3, %v1337_v8, %v1368_v46  ;;  %vm4132_vm3 = vmmov %vm4057_vm1 }
 0x310   :  { %v1370_v63 = vsel %vm4122_vm14, %v1338_v20, %v1369_v59  ;;  %1490 = vmatpush.msra.mxu3 %v1467_v57  ;;  %vm4133_vm14 = vmmov %vm4057_vm1 }
 0x312   :  { %1491 = vmatpush.msra.mxu3 %v1466_v35 }
 0x314   :  { %1492 = vmatpush.msra.mxu3 %v1465_v39 }
 0x316   :  { %1493 = vmatpush.msra.mxu3 %v1464_v4 }
 0x318   :  { %1494 = vmatpush.msra.mxu3 %v1463_v13  ;;  %v1816_v13 = vld [vmem:[%s3879_s2 + $0x150] sm:$0xff] }
 0x34a   :  { %v1376_v32 = vpop.permute.xlu2 %1375 }
 0x34b   :  { %v1381_v36 = vsel %vm4057_vm1, %v1363_v11, %v1376_v32 }
 0x34c   :  { %1417 = vmatmul.f32.vlgmr.msra.gmra.mxu2 %v1381_v36 }
 0x37e   :  { %v1378_v48 = vpop.permute.xlu0 %1377 }
 0x37f   :  { %v1382_v60 = vsel %vm4123_vm11, %v1370_v63, %v1378_v48  ;;  %vm4134_vm11 = vmmov %vm4057_vm1 }
 0x380   :  { %1420 = vmatmul.f32.gmra.mxu2 %v1382_v60 }
 0x3cf   :  { %v1418_v15 = vpop.f32.mrf.mxu2 }
 0x3d0   :  { %v1419_v16 = vadd.f32 %v1899_v34, %v1418_v15 }
 0x3d2   :  { %v1424_v19 = vmax.f32 %v1419_v16, 0.0 }
 0x3d4   :  { %v1426_v28 = vsel %vm4124_vm8, %v1424_v19, 0.0  ;;  %vm4135_vm8 = vmmov %vm4057_vm1 }
 0x403   :  { %v1421_v25 = vpop.f32.mrf.mxu2 }
 0x404   :  { %v1422_v50 = vadd.f32 %v1899_v34, %v1421_v25 }
 0x406   :  { %v1425_v29 = vmax.f32 %v1422_v50, 0.0 }
 0x408   :  { %v1427_v12 = vsel %vm4125_vm12, %v1425_v29, 0.0  ;;  %vm4136_vm12 = vmmov %vm4057_vm1 }
 0x409   :  { %v1428_v51 = vadd.f32 %v1427_v12, %v1426_v28  ;;  %v1819_v28 = vld [vmem:[%s3879_s2 + $0x168] sm:$0xff]  ;;  %v1818_v12 = vld [vmem:[%s3879_s2 + $0x160] sm:$0xff] }
 0x40a   :  { %1864 = vmatpush.msrb.mxu0 %v1819_v28 }
 0x40b   :  { %v1429_v33 = vrot.slane %v1428_v51, 4 }
 0x40c   :  { %1865 = vmatpush.msrb.mxu0 %v1818_v12 }
 0x40d   :  { %v1430_v52 = vadd.f32 %v1429_v33, %v1428_v51  ;;  %v1817_v51 = vld [vmem:[%s3879_s2 + $0x158] sm:$0xff]  ;;  %v1815_v33 = vld [vmem:[%s3879_s2 + $0x148] sm:$0xff] }
 0x40e   :  { %1866 = vmatpush.msrb.mxu0 %v1817_v51 }
 0x40f   :  { %v1431_v23 = vrot.slane %v1430_v52, 2 }
 0x410   :  { %1867 = vmatpush.msrb.mxu0 %v1816_v13 }
 0x411   :  { %v1432_v11 = vadd.f32 %v1431_v23, %v1430_v52  ;;  %v1814_v52 = vld [vmem:[%s3879_s2 + $0x140] sm:$0xff] }
 0x412   :  { %1868 = vmatpush.msrb.mxu0 %v1815_v33 }
 0x413   :  { %v1433_v41 = vrot.slane %v1432_v11, 1 }
 0x414   :  { %1869 = vmatpush.msrb.mxu0 %v1814_v52 }
 0x415   :  { %v1434_v27 = vadd.f32 %v1433_v41, %v1432_v11 }
 0x417   :  { %v1435_v18 = vmul.f32 %v1434_v27, %v2997_v22  ;;  %v1813_v27 = vld [vmem:[%s3879_s2 + $0x138] sm:$0xff] }
 0x418   :  { %1870 = vmatpush.msrb.mxu0 %v1813_v27 }
 0x419   :  { %v1437_v21 = vsub.f32 %v1425_v29, %v1435_v18  ;;  %v1436_v40 = vsub.f32 %v1424_v19, %v1435_v18 }
 0x41b   :  { %v1439_v37 = vmul.f32 %v1437_v21, %v1437_v21  ;;  %v1438_v8 = vmul.f32 %v1436_v40, %v1436_v40 }
 0x41d   :  { %v1441_v38 = vsel %vm4126_vm9, %v1439_v37, 0.0  ;;  %v1440_v20 = vsel %vm4127_vm13, %v1438_v8, 0.0  ;;  %vm4145_vm9 = vmmov %vm4057_vm1 }
 0x41e   :  { %v1442_v46 = vadd.f32 %v1441_v38, %v1440_v20  ;;  %vm4146_vm13 = vmmov %vm4057_vm1 }
 0x420   :  { %v1443_v59 = vrot.slane %v1442_v46, 4 }
 0x422   :  { %v1444_v63 = vadd.f32 %v1443_v59, %v1442_v46  ;;  %v1812_v46 = vld [vmem:[%s3879_s2 + $0x130] sm:$0xff] }
 0x423   :  { %1871 = vmatpush.msrb.mxu0 %v1812_v46 }
 0x424   :  { %v1445_v47 = vrot.slane %v1444_v63, 2 }
 0x426   :  { %v1446_v32 = vadd.f32 %v1445_v47, %v1444_v63 }
 0x428   :  { %v1447_v36 = vrot.slane %v1446_v32, 1 }
 0x42a   :  { %v1448_v48 = vadd.f32 %v1447_v36, %v1446_v32 }
 0x42c   :  { %v1449_v60 = vmul.f32 %v1448_v48, %v2997_v22  ;;  %v1900_v22 = vld [vmem:[%s3879_s2 + $0x128] ss:$0 sm:$0xff] }
 0x42e   :  { %v1450_v15 = vadd.f32 1e-05, %v1449_v60 }
 0x430   :  { %1942 = vrsqrt.f32 %v1450_v15  ;;  %vm1457_vm7 = vweird.f32 %v1450_v15 }
 0x436   :  { %v1943_v34 = vpop.eup %1942 }
 0x437   :  { %v1452_v44 = vmul.f32 %v1943_v34, %v1450_v15  ;;  %vm1458_vm6 = vweird.f32 %v1943_v34 }
 0x438   :  { %vm1459_vm2 = vmor %vm1457_vm7, %vm1458_vm6 }
 0x439   :  { %v1453_v6 = vmul.f32 %v1943_v34, %v1452_v44  ;;  %vm4147_vm6 = vmmov %vm4057_vm1 }
 0x43a   :  { %vm4148_vm7 = vmmov %vm4057_vm1 }
 0x43b   :  { %v1454_v17 = vmul.f32 0.5, %v1453_v6 }
 0x43d   :  { %v1455_v16 = vsub.f32 1.5, %v1454_v17 }
 0x43f   :  { %v1456_v57 = vmul.f32 %v1943_v34, %v1455_v16 }
 0x441   :  { %v1460_v25 = vsel %vm1459_vm2, %v1943_v34, %v1456_v57  ;;  %vm4149_vm2 = vmmov %vm4057_vm1 }
 0x442   :  { %v1461_v35 = vmul.f32 %v1460_v25, %v1436_v40  ;;  %v1462_v19 = vmul.f32 %v1460_v25, %v1437_v21 }
 0x444   :  { %1889 = vmatmul.msk.f32.vlgmr.msra.gmra.mxu3 %vm4128_vm5, %v1461_v35  ;;  %vm4150_vm5 = vmmov %vm4057_vm1 }
 0x44c   :  { %1890 = vmatmul.msk.f32.gmra.mxu3 %vm4129_vm4, %v1462_v19  ;;  %vm4151_vm4 = vmmov %vm4057_vm1 }
 0x4c7   :  { %v1496_v50 = vpop.f32.mrf.mxu3 }
 0x4c8   :  { %v3576_v39 = vadd.f32 %v1900_v22, %v1496_v50 }
 0x4ca   :  { %1550 = vrot.lane.b32.xlu1 %v3576_v39, %s1987_s22  ;;  %v1504_v23 = vrot.slane %v3576_v39, 1  ;;  %v1505_v11 = vrot.slane %v3576_v39, 2  ;;  %v1506_v41 = vrot.slane %v3576_v39, 3  ;;  %v1507_v18 = vrot.slane %v3576_v39, 4 }
 0x4cb   :  { %v1508_v21 = vrot.slane %v3576_v39, 5  ;;  %v1509_v40 = vrot.slane %v3576_v39, 6  ;;  %v1510_v37 = vrot.slane %v3576_v39, 7  ;;  %v3935_v36 = vperm.slane %v3576_v39, 0 }
 0x4cc   :  { %v3623_v48 = vperm.slane %v1504_v23, 0  ;;  %v3625_v60 = vperm.slane %v1505_v11, 0  ;;  %v3627_v15 = vperm.slane %v1506_v41, 0  ;;  %v3629_v34 = vperm.slane %v1507_v18, 0 }
 0x4cd   :  { %v3631_v44 = vperm.slane %v1508_v21, 0  ;;  %v3633_v6 = vperm.slane %v1509_v40, 0  ;;  %v3635_v17 = vperm.slane %v1510_v37, 0 }
 0x4cf   :  { %v1499_v29 = vpop.f32.mrf.mxu3 }
 0x4d0   :  { %v3580_v4 = vadd.f32 %v1900_v22, %v1499_v29 }
 0x4d2   :  { %1552 = vrot.lane.b32.xlu2 %v3580_v4, %s1987_s22  ;;  %v1511_v8 = vrot.slane %v3580_v4, 1  ;;  %v1512_v38 = vrot.slane %v3580_v4, 2  ;;  %v1513_v20 = vrot.slane %v3580_v4, 3  ;;  %v1514_v59 = vrot.slane %v3580_v4, 4 }
 0x4d3   :  { %v1515_v63 = vrot.slane %v3580_v4, 5  ;;  %v1516_v47 = vrot.slane %v3580_v4, 6  ;;  %v1517_v32 = vrot.slane %v3580_v4, 7  ;;  %v3936_v16 = vperm.slane %v3580_v4, 0 }
 0x4d4   :  { %v3638_v57 = vperm.slane %v1511_v8, 0  ;;  %v3640_v25 = vperm.slane %v1512_v38, 0  ;;  %v3642_v35 = vperm.slane %v1513_v20, 0  ;;  %v3644_v22 = vperm.slane %v1514_v59, 0 }
 0x4d5   :  { %v3646_v50 = vperm.slane %v1515_v63, 0  ;;  %v3648_v29 = vperm.slane %v1516_v47, 0  ;;  %v3650_v28 = vperm.slane %v1517_v32, 0 }
 0x52c   :  { %v1553_v19 = vpop.permute.xlu2 %1552 }
 0x52d   :  { %v1557_v12 = vadd.f32 %v1553_v19, %v3935_v36  ;;  %v1559_v51 = vadd.f32 %v1553_v19, %v3623_v48  ;;  %v1561_v13 = vadd.f32 %v1553_v19, %v3625_v60  ;;  %v1563_v33 = vadd.f32 %v1553_v19, %v3627_v15 }
 0x52e   :  { %v1565_v52 = vadd.f32 %v1553_v19, %v3629_v34  ;;  %v1567_v23 = vadd.f32 %v1553_v19, %v3631_v44  ;;  %v1569_v11 = vadd.f32 %v1553_v19, %v3633_v6  ;;  %v1571_v41 = vadd.f32 %v1553_v19, %v3635_v17 }
 0x52f   :  { %v1589_v27 = vmax.f32 %v1557_v12, 0.0  ;;  %v1591_v18 = vmax.f32 %v1559_v51, 0.0  ;;  %v1593_v21 = vmax.f32 %v1561_v13, 0.0  ;;  %v1595_v40 = vmax.f32 %v1563_v33, 0.0 }
 0x530   :  { %v1597_v37 = vmax.f32 %v1565_v52, 0.0  ;;  %v1599_v8 = vmax.f32 %v1567_v23, 0.0  ;;  %v1601_v38 = vmax.f32 %v1569_v11, 0.0  ;;  %v1603_v20 = vmax.f32 %v1571_v41, 0.0 }
 0x531   :  { %v1621_v46 = vmul.f32 %v3225_v54, %v1589_v27  ;;  %v1623_v59 = vmul.f32 %v3231_v31, %v1591_v18  ;;  %v1625_v63 = vmul.f32 %v3237_v49, %v1593_v21  ;;  %v1627_v47 = vmul.f32 %v3244_v2, %v1595_v40 }
 0x532   :  { %v1629_v32 = vmul.f32 %v3250_v10, %v1597_v37  ;;  %v1631_v36 = vmul.f32 %v3256_v7, %v1599_v8  ;;  %v1633_v12 = vmul.f32 %v3262_v53, %v1601_v38  ;;  %v1635_v51 = vmul.f32 %v3268_v0, %v1603_v20 }
 0x533   :  { %v3670_v13 = vsel %vm4130_vm10, %v1621_v46, 0.0  ;;  %v3673_v33 = vsel %vm4131_vm15, %v1623_v59, 0.0  ;;  %v3676_v54 = vsel %vm4132_vm3, %v1625_v63, 0.0  ;;  %v3679_v31 = vsel %vm4133_vm14, %v1627_v47, 0.0  ;;  %v4137_v59 = vld [vmem:[#allocation25_spill] sm:$0xff]  ;;  %v4138_v47 = vld [vmem:[#allocation26_spill] sm:$0xff]  ;;  %vm4152_vm10 = vmmov %vm4057_vm1 }
 0x534   :  { %v3682_v49 = vsel %vm4057_vm1, %v1629_v32, 0.0  ;;  %v3685_v2 = vsel %vm4134_vm11, %v1631_v36, 0.0  ;;  %v3688_v10 = vsel %vm4135_vm8, %v1633_v12, 0.0  ;;  %v3691_v7 = vsel %vm4136_vm12, %v1635_v51, 0.0  ;;  %v4139_v12 = vld [vmem:[#allocation27_spill] sm:$0xff]  ;;  %vm4162_vm15 = vmmov %vm4057_vm1 }
 0x535   :  { %v1573_v53 = vadd.f32 %v1553_v19, %v3936_v16  ;;  %v1575_v0 = vadd.f32 %v1553_v19, %v3638_v57  ;;  %v1577_v52 = vadd.f32 %v1553_v19, %v3640_v25  ;;  %v1579_v23 = vadd.f32 %v1553_v19, %v3642_v35  ;;  %v4140_v16 = vld [vmem:[#allocation28_spill] sm:$0xff]  ;;  %vm4163_vm3 = vmmov %vm4057_vm1 }
 0x536   :  { %v1581_v11 = vadd.f32 %v1553_v19, %v3644_v22  ;;  %v1583_v36 = vadd.f32 %v1553_v19, %v3646_v50  ;;  %v1585_v41 = vadd.f32 %v1553_v19, %v3648_v29  ;;  %v1587_v27 = vadd.f32 %v1553_v19, %v3650_v28  ;;  %vm4164_vm14 = vmmov %vm4057_vm1 }
 0x537   :  { %v1605_v18 = vmax.f32 %v1573_v53, 0.0  ;;  %v1607_v21 = vmax.f32 %v1575_v0, 0.0  ;;  %v1609_v40 = vmax.f32 %v1577_v52, 0.0  ;;  %v1611_v37 = vmax.f32 %v1579_v23, 0.0  ;;  %v4143_v53 = vld [vmem:[#allocation31_spill] sm:$0xff]  ;;  %v4144_v52 = vld [vmem:[#allocation32_spill] sm:$0xff]  ;;  %vm4165_vm11 = vmmov %vm4057_vm1 }
 0x538   :  { %v1613_v8 = vmax.f32 %v1581_v11, 0.0  ;;  %v1615_v38 = vmax.f32 %v1583_v36, 0.0  ;;  %v1617_v20 = vmax.f32 %v1585_v41, 0.0  ;;  %v1619_v46 = vmax.f32 %v1587_v27, 0.0  ;;  %vm4166_vm8 = vmmov %vm4057_vm1 }
 0x539   :  { %v1637_v63 = vmul.f32 %v4137_v59, %v1605_v18  ;;  %v1639_v32 = vmul.f32 %v4138_v47, %v1607_v21  ;;  %v1641_v51 = vmul.f32 %v4139_v12, %v1609_v40  ;;  %v1643_v9 = vmul.f32 %v4140_v16, %v1611_v37  ;;  %vm4167_vm12 = vmmov %vm4057_vm1 }
 0x53a   :  { %v1645_v14 = vmul.f32 %v4141_v1, %v1613_v8  ;;  %v1647_v19 = vmul.f32 %v4142_v43, %v1615_v38  ;;  %v1649_v0 = vmul.f32 %v4143_v53, %v1617_v20  ;;  %v1651_v23 = vmul.f32 %v4144_v52, %v1619_v46  ;;  %v4157_v52 = vld [vmem:[#allocation20_spill] sm:$0xff] }
 0x53b   :  { %v3711_v11 = vsel %vm4145_vm9, %v1637_v63, 0.0  ;;  %v3714_v36 = vsel %vm4146_vm13, %v1639_v32, 0.0  ;;  %v3717_v41 = vsel %vm4147_vm6, %v1641_v51, 0.0  ;;  %v3720_v27 = vsel %vm4148_vm7, %v1643_v9, 0.0  ;;  %v4154_v51 = vld [vmem:[#allocation17_spill] sm:$0xff]  ;;  %vm4168_vm9 = vmmov %vm4057_vm1 }
 0x53c   :  { %v3722_v16 = vpop.permute.xlu1 %1550  ;;  %v3725_v43 = vsel %vm4149_vm2, %v1645_v14, 0.0  ;;  %v3728_v1 = vsel %vm4150_vm5, %v1647_v19, 0.0  ;;  %v3731_v18 = vsel %vm4151_vm4, %v1649_v0, 0.0  ;;  %v3734_v21 = vsel %vm4152_vm10, %v1651_v23, 0.0  ;;  %v4156_v0 = vld [vmem:[#allocation19_spill] sm:$0xff] }
 0x53d   :  { %v4153_v40 = vperm.slane %v3576_v39, 0  ;;  %v1558_v9 = vadd.f32 %v3722_v16, %v3623_v48  ;;  %v1560_v14 = vadd.f32 %v3722_v16, %v3625_v60  ;;  %v1562_v8 = vadd.f32 %v3722_v16, %v3627_v15 }
 0x53e   :  { %v1564_v38 = vadd.f32 %v3722_v16, %v3629_v34  ;;  %v1566_v20 = vadd.f32 %v3722_v16, %v3631_v44  ;;  %v1568_v39 = vadd.f32 %v3722_v16, %v3633_v6  ;;  %v1570_v46 = vadd.f32 %v3722_v16, %v3635_v17  ;;  %v4155_v34 = vld [vmem:[#allocation18_spill] sm:$0xff]  ;;  %v4158_v6 = vld [vmem:[#allocation21_spill] sm:$0xff] }
 0x53f   :  { %v1556_v37 = vadd.f32 %v3722_v16, %v4153_v40  ;;  %v1590_v48 = vmax.f32 %v1558_v9, 0.0  ;;  %v1592_v63 = vmax.f32 %v1560_v14, 0.0  ;;  %v1594_v47 = vmax.f32 %v1562_v8, 0.0  ;;  %v4161_v14 = vld [vmem:[#allocation24_spill] sm:$0xff] }
 0x540   :  { %v1596_v60 = vmax.f32 %v1564_v38, 0.0  ;;  %v1598_v32 = vmax.f32 %v1566_v20, 0.0  ;;  %v1600_v12 = vmax.f32 %v1568_v39, 0.0  ;;  %v1602_v15 = vmax.f32 %v1570_v46, 0.0 }
 0x541   :  { %v1588_v59 = vmax.f32 %v1556_v37, 0.0  ;;  %v1622_v53 = vmul.f32 %v4155_v34, %v1590_v48  ;;  %v1624_v44 = vmul.f32 %v4156_v0, %v1592_v63  ;;  %v1626_v23 = vmul.f32 %v4157_v52, %v1594_v47  ;;  %v4160_v37 = vld [vmem:[#allocation23_spill] sm:$0xff] }
 0x542   :  { %v1628_v40 = vmul.f32 %v4158_v6, %v1596_v60  ;;  %v1630_v17 = vmul.f32 %v4159_v30, %v1598_v32  ;;  %v1632_v9 = vmul.f32 %v4160_v37, %v1600_v12  ;;  %v1634_v8 = vmul.f32 %v4161_v14, %v1602_v15 }
 0x543   :  { %v1620_v19 = vmul.f32 %v4154_v51, %v1588_v59  ;;  %v1661_v20 = vsel %vm4163_vm3, %v1622_v53, 0.0  ;;  %v1670_v39 = vsel %vm4164_vm14, %v1624_v44, 0.0  ;;  %v1679_v46 = vsel %vm4057_vm1, %v1626_v23, 0.0  ;;  %vm4178_vm3 = vmmov %vm4057_vm1 }
 0x544   :  { %v1663_v48 = vadd.f32 %v3673_v33, %v1661_v20  ;;  %v1672_v63 = vadd.f32 %v3676_v54, %v1670_v39  ;;  %v1681_v30 = vadd.f32 %v3679_v31, %v1679_v46  ;;  %v1688_v47 = vsel %vm4165_vm11, %v1628_v40, 0.0  ;;  %vm4179_vm14 = vmmov %vm4057_vm1 }
 0x545   :  { %v1652_v38 = vsel %vm4162_vm15, %v1620_v19, 0.0  ;;  %v1697_v60 = vsel %vm4166_vm8, %v1630_v17, 0.0  ;;  %v1706_v32 = vsel %vm4167_vm12, %v1632_v9, 0.0  ;;  %v1715_v12 = vsel %vm4168_vm9, %v1634_v8, 0.0  ;;  %vm4177_vm15 = vmmov %vm4057_vm1 }
 0x546   :  { %v1654_v59 = vadd.f32 %v3670_v13, %v1652_v38  ;;  %v1664_v51 = vrot.slane %v1663_v48, 4  ;;  %v1673_v19 = vrot.slane %v1672_v63, 4  ;;  %v1682_v34 = vrot.slane %v1681_v30, 4  ;;  %vm4180_vm11 = vmmov %vm4057_vm1 }
 0x547   :  { %v1690_v13 = vadd.f32 %v3682_v49, %v1688_v47  ;;  %v1699_v33 = vadd.f32 %v3685_v2, %v1697_v60  ;;  %v1708_v54 = vadd.f32 %v3688_v10, %v1706_v32  ;;  %v1717_v31 = vadd.f32 %v3691_v7, %v1715_v12  ;;  %vm4181_vm8 = vmmov %vm4057_vm1 }
 0x548   :  { %v1655_v15 = vrot.slane %v1654_v59, 4  ;;  %v1665_v0 = vadd.f32 %v1664_v51, %v1663_v48  ;;  %v1674_v44 = vadd.f32 %v1673_v19, %v1672_v63  ;;  %v1683_v52 = vadd.f32 %v1682_v34, %v1681_v30  ;;  %vm4182_vm12 = vmmov %vm4057_vm1 }
 0x549   :  { %v1691_v23 = vrot.slane %v1690_v13, 4  ;;  %v1700_v6 = vrot.slane %v1699_v33, 4  ;;  %v1709_v40 = vrot.slane %v1708_v54, 4  ;;  %v1718_v17 = vrot.slane %v1717_v31, 4  ;;  %vm4183_vm9 = vmmov %vm4057_vm1 }
 0x54a   :  { %v1656_v53 = vadd.f32 %v1655_v15, %v1654_v59  ;;  %v1666_v9 = vrot.slane %v1665_v0, 2  ;;  %v1675_v14 = vrot.slane %v1674_v44, 2  ;;  %v1684_v8 = vrot.slane %v1683_v52, 2 }
 0x54b   :  { %v1692_v38 = vadd.f32 %v1691_v23, %v1690_v13  ;;  %v1701_v49 = vadd.f32 %v1700_v6, %v1699_v33  ;;  %v1710_v20 = vadd.f32 %v1709_v40, %v1708_v54  ;;  %v1719_v2 = vadd.f32 %v1718_v17, %v1717_v31 }
 0x54c   :  { %v1657_v37 = vrot.slane %v1656_v53, 2  ;;  %v1667_v10 = vadd.f32 %v1666_v9, %v1665_v0  ;;  %v1676_v46 = vadd.f32 %v1675_v14, %v1674_v44  ;;  %v1685_v7 = vadd.f32 %v1684_v8, %v1683_v52 }
 0x54d   :  { %v1693_v59 = vrot.slane %v1692_v38, 2  ;;  %v1702_v48 = vrot.slane %v1701_v49, 2  ;;  %v1711_v63 = vrot.slane %v1710_v20, 2  ;;  %v1720_v30 = vrot.slane %v1719_v2, 2 }
 0x54e   :  { %v1658_v39 = vadd.f32 %v1657_v37, %v1656_v53  ;;  %v1668_v60 = vrot.slane %v1667_v10, 1  ;;  %v1677_v32 = vrot.slane %v1676_v46, 1  ;;  %v1686_v12 = vrot.slane %v1685_v7, 1 }
 0x54f   :  { %v1694_v15 = vadd.f32 %v1693_v59, %v1692_v38  ;;  %v1703_v51 = vadd.f32 %v1702_v48, %v1701_v49  ;;  %v1712_v19 = vadd.f32 %v1711_v63, %v1710_v20  ;;  %v1721_v34 = vadd.f32 %v1720_v30, %v1719_v2 }
 0x550   :  { %v1659_v47 = vrot.slane %v1658_v39, 1  ;;  %v1669_v33 = vadd.f32 %v1668_v60, %v1667_v10  ;;  %v1678_v54 = vadd.f32 %v1677_v32, %v1676_v46  ;;  %v1687_v31 = vadd.f32 %v1686_v12, %v1685_v7  ;;  %v1978_v12 = vld [vmem:[%s3877_s1 + $0xa0] sm:$0xff] }
 0x551   :  { %v1695_v53 = vrot.slane %v1694_v15, 1  ;;  %v1704_v0 = vrot.slane %v1703_v51, 1  ;;  %v1713_v44 = vrot.slane %v1712_v19, 1  ;;  %v1722_v52 = vrot.slane %v1721_v34, 1 }
 0x552   :  { %v1660_v13 = vadd.f32 %v1659_v47, %v1658_v39  ;;  %v1797_v6 = vmul.f32 %v1669_v33, %v4094_v42  ;;  %v1798_v40 = vmul.f32 %v1678_v54, %v4095_v62  ;;  %v1799_v17 = vmul.f32 %v1687_v31, %v4096_v5  ;;  %v1981_v33 = vld [vmem:[%s3877_s1 + $0xd0] sm:$0xff]  ;;  %v1982_v31 = vld [vmem:[%s3877_s1 + $0xe0] sm:$0xff] }
 0x553   :  { %v1696_v37 = vadd.f32 %v1695_v53, %v1694_v15  ;;  %v1705_v9 = vadd.f32 %v1704_v0, %v1703_v51  ;;  %v1714_v14 = vadd.f32 %v1713_v44, %v1712_v19  ;;  %v1723_v8 = vadd.f32 %v1722_v52, %v1721_v34  ;;  %v1979_v51 = vld [vmem:[%s3877_s1 + $0xb0] sm:$0xff]  ;;  %v1980_v34 = vld [vmem:[%s3877_s1 + $0xc0] sm:$0xff] }
 0x554   :  { %v1796_v23 = vmul.f32 %v1660_v13, %v2364_v3  ;;  %vm4169_vm13 = vcmask 1041409   ;;  %v4170_v49 = vperm.slane %v3580_v4, 0  ;;  %v1574_v2 = vadd.f32 %v3722_v16, %v3638_v57  ;;  %v1983_v0 = vld [vmem:[%s3877_s1 + $0xf0] sm:$0xff] }
 0x555   :  { %v1576_v3 = vadd.f32 %v3722_v16, %v3640_v25  ;;  %v1800_v42 = vmul.f32 %v1696_v37, %v4097_v56  ;;  %v1801_v62 = vmul.f32 %v1705_v9, %v4100_v45  ;;  %v1802_v5 = vmul.f32 %v1714_v14, %v4104_v55 }
 0x556   :  { %v1838_v38 = vsel %vm4169_vm13, %v1797_v6, %v1796_v23  ;;  %v1572_v20 = vadd.f32 %v3722_v16, %v4170_v49  ;;  %v1803_v39 = vmul.f32 %v1723_v8, %v4108_v24  ;;  %vm4171_vm6 = vcmask 1042434   ;;  %vm4184_vm13 = vmmov %vm4057_vm1 }
 0x557   :  { %v1839_v10 = vsel %vm4171_vm6, %v1798_v40, %v1838_v38  ;;  %v1578_v4 = vadd.f32 %v3722_v16, %v3642_v35  ;;  %v1580_v46 = vadd.f32 %v3722_v16, %v3644_v22  ;;  %v1582_v57 = vadd.f32 %v3722_v16, %v3646_v50 }
 0x558   :  { %vm4172_vm7 = vcmask 1043459   ;;  %v1584_v56 = vadd.f32 %v3722_v16, %v3648_v29  ;;  %v1586_v45 = vadd.f32 %v3722_v16, %v3650_v28  ;;  %v1604_v55 = vmax.f32 %v1572_v20, 0.0  ;;  %v1976_v29 = vld [vmem:[%s3877_s1 + $0x80] sm:$0xff]  ;;  %v1977_v28 = vld [vmem:[%s3877_s1 + $0x90] sm:$0xff] }
 0x559   :  { %v1840_v25 = vsel %vm4172_vm7, %v1799_v17, %v1839_v10  ;;  %vm4173_vm2 = vcmask 1044484   ;;  %v1606_v7 = vmax.f32 %v1574_v2, 0.0  ;;  %v1608_v59 = vmax.f32 %v1576_v3, 0.0 }
 0x55a   :  { %v1841_v24 = vsel %vm4173_vm2, %v1800_v42, %v1840_v25  ;;  %v1610_v35 = vmax.f32 %v1578_v4, 0.0  ;;  %vm4174_vm5 = vcmask 1045509   ;;  %v1612_v22 = vmax.f32 %v1580_v46, 0.0 }
 0x55b   :  { %v1842_v48 = vsel %vm4174_vm5, %v1801_v62, %v1841_v24  ;;  %v1614_v63 = vmax.f32 %v1582_v57, 0.0  ;;  %v1616_v30 = vmax.f32 %v1584_v56, 0.0  ;;  %vm4175_vm4 = vcmask 1046534  }
 0x55c   :  { %v1843_v50 = vsel %vm4175_vm4, %v1802_v5, %v1842_v48  ;;  %v1618_v47 = vmax.f32 %v1586_v45, 0.0  ;;  %v1636_v60 = vmul.f32 %v1976_v29, %v1604_v55  ;;  %v1638_v16 = vmul.f32 %v1977_v28, %v1606_v7 }
 0x55d   :  { %vm4176_vm10 = vcmask 1047559   ;;  %v1640_v15 = vmul.f32 %v1978_v12, %v1608_v59  ;;  %v1642_v19 = vmul.f32 %v1979_v51, %v1610_v35  ;;  %v1644_v13 = vmul.f32 %v1980_v34, %v1612_v22 }
 0x55e   :  { %v1844_v32 = vsel %vm4176_vm10, %v1803_v39, %v1843_v50  ;;  %v1646_v54 = vmul.f32 %v1981_v33, %v1614_v63  ;;  %v1648_v53 = vmul.f32 %v1982_v31, %v1616_v30  ;;  %v1650_v44 = vmul.f32 %v1983_v0, %v1618_v47 }
 0x55f   :  { %1891 = vmatmul.msk.f32.vlgmr.msrb.gmra.mxu0 %vm4177_vm15, %v1844_v32  ;;  %v1724_v52 = vsel %vm4178_vm3, %v1636_v60, 0.0  ;;  %v1733_v6 = vsel %vm4179_vm14, %v1638_v16, 0.0  ;;  %v1742_v40 = vsel %vm4057_vm1, %v1640_v15, 0.0  ;;  %v1751_v17 = vsel %vm4180_vm11, %v1642_v19, 0.0  ;;  %vm4197_vm3 = vmmov %vm4057_vm1 }
 0x560   :  { %v1726_v23 = vadd.f32 %v3711_v11, %v1724_v52  ;;  %v1735_v37 = vadd.f32 %v3714_v36, %v1733_v6  ;;  %v1744_v9 = vadd.f32 %v3717_v41, %v1742_v40  ;;  %v1753_v14 = vadd.f32 %v3720_v27, %v1751_v17 }
 0x561   :  { %v1760_v8 = vsel %vm4181_vm8, %v1644_v13, 0.0  ;;  %v1769_v20 = vsel %vm4182_vm12, %v1646_v54, 0.0  ;;  %v1778_v11 = vsel %vm4183_vm9, %v1648_v53, 0.0  ;;  %v1787_v27 = vsel %vm4184_vm13, %v1650_v44, 0.0 }
 0x562   :  { %v1727_v38 = vrot.slane %v1726_v23, 4  ;;  %v1762_v49 = vadd.f32 %v3725_v43, %v1760_v8  ;;  %v1736_v2 = vrot.slane %v1735_v37, 4  ;;  %v1745_v3 = vrot.slane %v1744_v9, 4 }
 0x563   :  { %v1754_v42 = vrot.slane %v1753_v14, 4  ;;  %v1771_v62 = vadd.f32 %v3728_v1, %v1769_v20  ;;  %v1780_v41 = vadd.f32 %v3731_v18, %v1778_v11  ;;  %v1789_v56 = vadd.f32 %v3734_v21, %v1787_v27  ;;  %v4189_v11 = vld [vmem:[#allocation14_spill] sm:$0xff]  ;;  %v1901_v27 = vld [vmem:[%s3879_s2 + $0x170] ss:$0 sm:$0xff] }
 0x564   :  { %v1728_v5 = vadd.f32 %v1727_v38, %v1726_v23  ;;  %v1763_v36 = vrot.slane %v1762_v49, 4  ;;  %v1737_v39 = vadd.f32 %v1736_v2, %v1735_v37  ;;  %v1746_v10 = vadd.f32 %v1745_v3, %v1744_v9  ;;  %v4185_v37 = vld [vmem:[#allocation12_spill] sm:$0xff]  ;;  %v4187_v38 = vld [vmem:[#allocation13_spill] sm:$0xff]  ;;  %v4191_v3 = vld [vmem:[#allocation15_spill] sm:$0xff] }
 0x565   :  { %v1755_v4 = vadd.f32 %v1754_v42, %v1753_v14  ;;  %v1772_v46 = vrot.slane %v1771_v62, 4  ;;  %v1781_v25 = vrot.slane %v1780_v41, 4  ;;  %v1790_v48 = vrot.slane %v1789_v56, 4 }
 0x566   :  { %v1729_v43 = vrot.slane %v1728_v5, 2  ;;  %v1764_v57 = vadd.f32 %v1763_v36, %v1762_v49  ;;  %v1738_v45 = vrot.slane %v1737_v39, 2  ;;  %v1747_v55 = vrot.slane %v1746_v10, 2 }
 0x567   :  { %v1756_v24 = vrot.slane %v1755_v4, 2  ;;  %v1773_v7 = vadd.f32 %v1772_v46, %v1771_v62  ;;  %v1782_v35 = vadd.f32 %v1781_v25, %v1780_v41  ;;  %v1791_v60 = vadd.f32 %v1790_v48, %v1789_v56 }
 0x568   :  { %v1730_v1 = vadd.f32 %v1729_v43, %v1728_v5  ;;  %v1765_v59 = vrot.slane %v1764_v57, 2  ;;  %v1739_v18 = vadd.f32 %v1738_v45, %v1737_v39  ;;  %v1748_v22 = vadd.f32 %v1747_v55, %v1746_v10 }
 0x569   :  { %v1757_v63 = vadd.f32 %v1756_v24, %v1755_v4  ;;  %v1774_v30 = vrot.slane %v1773_v7, 2  ;;  %v1783_v29 = vrot.slane %v1782_v35, 2  ;;  %v1792_v19 = vrot.slane %v1791_v60, 2 }
 0x56a   :  { %v1731_v50 = vrot.slane %v1730_v1, 1  ;;  %v1766_v47 = vadd.f32 %v1765_v59, %v1764_v57  ;;  %v1740_v28 = vrot.slane %v1739_v18, 1  ;;  %v1749_v16 = vrot.slane %v1748_v22, 1 }
 0x56b   :  { %v1758_v32 = vrot.slane %v1757_v63, 1  ;;  %v1775_v21 = vadd.f32 %v1774_v30, %v1773_v7  ;;  %v1784_v51 = vadd.f32 %v1783_v29, %v1782_v35  ;;  %v1793_v0 = vadd.f32 %v1792_v19, %v1791_v60 }
 0x56c   :  { %v1732_v12 = vadd.f32 %v1731_v50, %v1730_v1  ;;  %v1767_v15 = vrot.slane %v1766_v47, 1  ;;  %v1741_v34 = vadd.f32 %v1740_v28, %v1739_v18  ;;  %v1750_v13 = vadd.f32 %v1749_v16, %v1748_v22 }
 0x56d   :  { %v1759_v33 = vadd.f32 %v1758_v32, %v1757_v63  ;;  %v1776_v54 = vrot.slane %v1775_v21, 1  ;;  %v1785_v53 = vrot.slane %v1784_v51, 1  ;;  %v1794_v17 = vrot.slane %v1793_v0, 1 }
 0x56e   :  { %v1768_v31 = vadd.f32 %v1767_v15, %v1766_v47  ;;  %v1804_v44 = vmul.f32 %v1732_v12, %v4106_v61  ;;  %v1805_v23 = vmul.f32 %v1741_v34, %v4107_v26  ;;  %v1806_v6 = vmul.f32 %v1750_v13, %v4109_v58  ;;  %v4193_v58 = vld [vmem:[#allocation16_spill] sm:$0xff] }
 0x56f   :  { %v1777_v52 = vadd.f32 %v1776_v54, %v1775_v21  ;;  %v1786_v40 = vadd.f32 %v1785_v53, %v1784_v51  ;;  %v1807_v9 = vmul.f32 %v1759_v33, %v4185_v37  ;;  %vm4186_vm6 = vcmask 1041409  }
 0x570   :  { %v1845_v14 = vsel %vm4186_vm6, %v1805_v23, %v1804_v44  ;;  %v1795_v8 = vadd.f32 %v1794_v17, %v1793_v0  ;;  %v1808_v49 = vmul.f32 %v1768_v31, %v4187_v38  ;;  %vm4188_vm7 = vcmask 1042434  }
 0x571   :  { %v1846_v20 = vsel %vm4188_vm7, %v1806_v6, %v1845_v14  ;;  %v1809_v2 = vmul.f32 %v1777_v52, %v4189_v11  ;;  %vm4190_vm2 = vcmask 1043459   ;;  %v1810_v42 = vmul.f32 %v1786_v40, %v4191_v3 }
 0x572   :  { %v1847_v61 = vsel %vm4190_vm2, %v1807_v9, %v1846_v20  ;;  %vm4192_vm5 = vcmask 1044484   ;;  %v1811_v62 = vmul.f32 %v1795_v8, %v4193_v58  ;;  %vm4194_vm4 = vcmask 1045509  }
 0x573   :  { %v1848_v26 = vsel %vm4192_vm5, %v1808_v49, %v1847_v61  ;;  %vm4195_vm10 = vcmask 1046534   ;;  %vm4196_vm15 = vcmask 1047559  }
 0x574   :  { %v1849_v5 = vsel %vm4194_vm4, %v1809_v2, %v1848_v26 }
 0x575   :  { %v1850_v36 = vsel %vm4195_vm10, %v1810_v42, %v1849_v5 }
 0x576   :  { %v1851_v41 = vsel %vm4196_vm15, %v1811_v62, %v1850_v36 }
 0x577   :  { %1892 = vmatmul.msk.f32.gmra.mxu0 %vm4197_vm3, %v1851_v41 }
 0x5dc   :  { %v1873_v39 = vpop.f32.mrf.mxu0 }
 0x5dd   :  { %v1874_v10 = vadd.f32 %v1901_v27, %v1873_v39 }
 0x5df   :  { %1879 = vst.msk [vmem:[%s3880_s3] sm:$0xff] %vm554_vm0, %v1874_v10 }
 0x5f4   :  { %v1876_v4 = vpop.f32.mrf.mxu0 }
 0x5f5   :  { %v1877_v46 = vadd.f32 %v1901_v27, %v1876_v4 }
 0x5f7   :  { %1880 = vst.msk [vmem:[%s3880_s3 + $0x8] sm:$0xff] %vm554_vm0, %v1877_v46 }

</bundles_post_ra>
